<compile_context>
chip_gen: v5e
topology: v5e:2x2
jax: 0.10.0
libtpu: 0.0.40
codegen_flags: <defaults>
</compile_context>

<pallas_src>
import functools
import math

import jax
import jax.numpy as jnp
from jax import lax
from jax.experimental import pallas as pl
from jax.experimental.pallas import tpu as pltpu

# dot_general dimension numbers for "contract last dim of both operands"
# (i.e. A @ B.T without materializing the transpose - the MXU-native NT form).
_NT = (((1,), (1,)), ((), ()))


def _attention_kernel(x_ref, mask_ref, w_ref, b_ref, o_ref, *,
                      num_heads, head_dim, q_block, shared_qkv):
    """One (batch, query-tile) grid step.

    x_ref:    (1, S, H)       hidden states, compute dtype (bf16 in production)
    mask_ref: (1, 1, S)       additive key mask, f32
    w_ref:    (H, H) or (3H, H)  projection weight(s), (out, in) layout
    b_ref:    (1, H) or (1, 3H)  projection bias(es), f32
    o_ref:    (1, q_block, H) output context
    """
    H = num_heads * head_dim
    cd = w_ref.dtype                       # MXU operand dtype (bf16 or f32)
    x = x_ref[0]                           # (S, H)
    S = x.shape[0]

    # Single fused projection.  Weight stays in (out, in) layout: contract
    # x dim 1 against weight dim 1 -> y = x @ W^T (+ bias), f32 accumulation.
    proj = lax.dot_general(x, w_ref[...], _NT,
                           preferred_element_type=jnp.float32) + b_ref[...]

    if shared_qkv:
        # Module-as-written semantics: K == V == Q projection.
        q_src = proj                                    # (S, H) f32
        kv_c = proj.astype(cd)                          # cast once for the MXU
        k_c = kv_c
        v_c = kv_c
    else:
        q_src = proj[:, :H]
        k_c = proj[:, H:2 * H].astype(cd)
        v_c = proj[:, 2 * H:].astype(cd)

    # Query rows for this tile (full projection already covers them).
    if q_block == S:
        q_rows = q_src
    else:
        q_rows = lax.dynamic_slice_in_dim(
            q_src, pl.program_id(1) * q_block, q_block, axis=0)

    # Fold 1/sqrt(d) into Q once (S*H multiplies) instead of into every (S,S)
    # scores tensor (num_heads * S^2 multiplies).
    scale = 1.0 / math.sqrt(head_dim)
    q_c = (q_rows * scale).astype(cd)                   # (q_block, H)

    mask = mask_ref[0]                                  # (1, S) f32 additive

    ctx_parts = []
    for h in range(num_heads):                          # static unroll over heads
        lo = h * head_dim
        hi = lo + head_dim
        qh = q_c[:, lo:hi]                              # (q_block, d)
        kh = k_c[:, lo:hi]                              # (S, d)
        vh = v_c[:, lo:hi]                              # (S, d)

        # Q @ K^T without transposing K (contract dim 1 of both operands).
        s = lax.dot_general(qh, kh, _NT, preferred_element_type=jnp.float32)
        s = s + mask                                    # (q_block, S) + (1, S)

        # Numerically stable softmax, all f32; normalization via the EUP
        # approximate reciprocal (rides an otherwise-idle issue slot).
        s = s - jnp.max(s, axis=-1, keepdims=True)
        p = jnp.exp(s)
        inv = pl.reciprocal(jnp.sum(p, axis=-1, keepdims=True), approx=True)
        p = p * inv
        # TODO(synk): attention-probs dropout omitted (inference / eval mode).

        ctx_parts.append(jnp.dot(p.astype(cd), vh,
                                 preferred_element_type=jnp.float32))

    # Pack adjacent head outputs into 128-lane chunks (head_dim is typically
    # 64) before the final concat to avoid sub-128-lane shuffles.
    if head_dim < 128 and num_heads % 2 == 0 and len(ctx_parts) > 1:
        ctx_parts = [jnp.concatenate(ctx_parts[i:i + 2], axis=-1)
                     for i in range(0, num_heads, 2)]
    ctx = ctx_parts[0] if len(ctx_parts) == 1 else jnp.concatenate(ctx_parts,
                                                                   axis=-1)

    # Single lane-dense (q_block, H) store.
    o_ref[0] = ctx.astype(o_ref.dtype)


def bert_self_attention(hidden_states, attention_mask,
                        wq, bq, wk=None, bk=None, wv=None, bv=None, *,
                        num_heads, shared_qkv=False,
                        compute_dtype=jnp.bfloat16, q_block=None,
                        vmem_limit_bytes=32 * 1024 * 1024):
    """Fused multi-head self-attention.

    hidden_states: (B, S, H); attention_mask: additive per-key mask with B*S
    elements (e.g. (B, 1, 1, S) of 0 / -10000); w*: nn.Linear weights in
    (out, in) layout; b*: (out,) biases.

    shared_qkv=True  -> K = V = Q projection (the module's actual semantics),
                        one resident weight, one projection matmul.
    shared_qkv=False -> separate Wq/Wk/Wv, fused into a single (3H, H) weight.
    """
    B, S, H = hidden_states.shape
    assert H % num_heads == 0, "hidden size must be divisible by num_heads"
    head_dim = H // num_heads

    if attention_mask.size != B * S:
        raise ValueError(
            "attention_mask must be a per-key additive mask with B*S elements; "
            f"got shape {attention_mask.shape} for B={B}, S={S}")
    mask3 = attention_mask.reshape(B, 1, S).astype(jnp.float32)

    x = hidden_states.astype(compute_dtype)
    if shared_qkv:
        w = wq.astype(compute_dtype)                                   # (H, H)
        b = bq.reshape(1, H).astype(jnp.float32)
        proj_out = H
    else:
        w = jnp.concatenate([wq, wk, wv], axis=0).astype(compute_dtype)  # (3H, H)
        b = jnp.concatenate([bq, bk, bv], axis=0).reshape(1, 3 * H).astype(
            jnp.float32)
        proj_out = 3 * H

    if q_block is None:
        # Only split the query dimension when the batch axis alone cannot feed
        # both v7x TensorCores (B == 1); splitting re-does the K/V projection
        # per tile, so it is not worth it when B already parallelizes.
        if B == 1 and S > 256 and S % 256 == 0:
            q_block = 256
        else:
            q_block = S
    assert S % q_block == 0, "q_block must divide the sequence length"
    n_q = S // q_block

    kernel = functools.partial(_attention_kernel, num_heads=num_heads,
                               head_dim=head_dim, q_block=q_block,
                               shared_qkv=shared_qkv)

    flops = (2 * B * S * H * proj_out                       # projection(s)
             + 4 * B * num_heads * S * S * head_dim)        # QK^T + P@V
    bytes_accessed = (x.size * x.dtype.itemsize
                      + mask3.size * 4
                      + w.size * w.dtype.itemsize
                      + b.size * 4
                      + B * S * H * hidden_states.dtype.itemsize)
    cost = pl.CostEstimate(flops=int(flops),
                           transcendentals=int(B * num_heads * S * S),
                           bytes_accessed=int(bytes_accessed))

    def _call(single_buffer_weights):
        if single_buffer_weights:
            # Constant index maps -> double-buffering buys nothing; keep a
            # single resident copy of weights/biases in VMEM.
            wspec = pl.BlockSpec((proj_out, H), lambda bi, qi: (0, 0),
                                 pipeline_mode=pl.Buffered(1))
            bspec = pl.BlockSpec((1, proj_out), lambda bi, qi: (0, 0),
                                 pipeline_mode=pl.Buffered(1))
        else:
            wspec = pl.BlockSpec((proj_out, H), lambda bi, qi: (0, 0))
            bspec = pl.BlockSpec((1, proj_out), lambda bi, qi: (0, 0))

        return pl.pallas_call(
            kernel,
            out_shape=jax.ShapeDtypeStruct((B, S, H), hidden_states.dtype),
            grid_spec=pltpu.PrefetchScalarGridSpec(
                num_scalar_prefetch=0,
                grid=(B, n_q),
                in_specs=[
                    pl.BlockSpec((1, S, H), lambda bi, qi: (bi, 0, 0)),  # x
                    pl.BlockSpec((1, 1, S), lambda bi, qi: (bi, 0, 0)),  # mask
                    wspec,                                               # W
                    bspec,                                               # bias
                ],
                out_specs=pl.BlockSpec((1, q_block, H),
                                       lambda bi, qi: (bi, qi, 0)),
            ),
            compiler_params=pltpu.CompilerParams(
                dimension_semantics=("parallel", "parallel"),
                vmem_limit_bytes=vmem_limit_bytes,
            ),
            cost_estimate=cost,
        )(x, mask3, w, b)

    try:
        return _call(True)
    except Exception:
        # TODO(synk): pl.Buffered(1) single-buffering unavailable on this jax
        # version; fall back to default double-buffered resident weights.
        return _call(False)


def bert_self_attention_forward(hidden_states, attention_mask,
                                wq, bq, wk, bk, wv, bv, *, num_heads,
                                compute_dtype=jnp.bfloat16, **kwargs):
    """Replicates BertSelfAttention.forward exactly as written: Q, K and V are
    all taken from the *query* projection, so the key/value weights do not
    affect the output and the kernel runs in shared-QKV mode (one projection
    matmul, one resident weight)."""
    # TODO(synk): get_attention_matrices=True (returning (B, h, S, S) probs) is
    # not exposed from the fused kernel; default forward returns (ctx, None).
    ctx = bert_self_attention(hidden_states, attention_mask, wq, bq,
                              num_heads=num_heads, shared_qkv=True,
                              compute_dtype=compute_dtype, **kwargs)
    return ctx, None


# ----------------------------- pure-JAX references -------------------------

def _reference_forward(hidden_states, attention_mask, wq, bq, num_heads):
    """Mirror of the PyTorch forward as written (Q projection reused for K, V)."""
    B, S, H = hidden_states.shape
    d = H // num_heads
    mixed_query = hidden_states @ wq.T + bq

    def split(t):
        return t.reshape(B, S, num_heads, d).transpose(0, 2, 1, 3)

    q = split(mixed_query)
    k = split(mixed_query)
    v = split(mixed_query)
    scores = jnp.einsum('bhqd,bhkd->bhqk', q, k) / math.sqrt(d)
    scores = scores + attention_mask.reshape(B, 1, 1, S)
    probs = jax.nn.softmax(scores, axis=-1)
    ctx = jnp.einsum('bhqk,bhkd->bhqd', probs, v)
    return ctx.transpose(0, 2, 1, 3).reshape(B, S, H)


def _reference_attention_split(hidden_states, attention_mask,
                               wq, bq, wk, bk, wv, bv, num_heads):
    """Standard attention with distinct Q/K/V (for the fused split-QKV path)."""
    B, S, H = hidden_states.shape
    d = H // num_heads

    def split(t):
        return t.reshape(B, S, num_heads, d).transpose(0, 2, 1, 3)

    q = split(hidden_states @ wq.T + bq)
    k = split(hidden_states @ wk.T + bk)
    v = split(hidden_states @ wv.T + bv)
    scores = jnp.einsum('bhqd,bhkd->bhqk', q, k) / math.sqrt(d)
    scores = scores + attention_mask.reshape(B, 1, 1, S)
    probs = jax.nn.softmax(scores, axis=-1)
    ctx = jnp.einsum('bhqk,bhkd->bhqd', probs, v)
    return ctx.transpose(0, 2, 1, 3).reshape(B, S, H)


if __name__ == "__main__":
    # Full-precision references so the f32 kernel path can be checked tightly.
    jax.config.update("jax_default_matmul_precision", "highest")

    batch, seq, hidden, num_heads = 2, 8, 32, 4

    key = jax.random.PRNGKey(0)
    k_x, k_wq, k_bq, k_wk, k_bk, k_wv, k_bv = jax.random.split(key, 7)

    x = jax.random.normal(k_x, (batch, seq, hidden), dtype=jnp.float32)

    bound = 1.0 / math.sqrt(hidden)

    def lin(kw, kb):
        w = jax.random.uniform(kw, (hidden, hidden), minval=-bound,
                               maxval=bound, dtype=jnp.float32)
        b = jax.random.uniform(kb, (hidden,), minval=-bound, maxval=bound,
                               dtype=jnp.float32)
        return w, b

    wq, bq = lin(k_wq, k_bq)
    wk, bk = lin(k_wk, k_bk)   # present in the module but unused by its forward
    wv, bv = lin(k_wv, k_bv)   # present in the module but unused by its forward

    # Standard BERT additive mask (B, 1, 1, S): last 3 tokens of batch 1 padded.
    pad = jnp.array([[1.0] * seq,
                     [1.0] * (seq - 3) + [0.0] * 3], dtype=jnp.float32)
    attention_mask = (1.0 - pad)[:, None, None, :] * -10000.0

    ref = _reference_forward(x, attention_mask, wq, bq, num_heads)

    # 1) Module-faithful forward, f32 compute (tolerance dominated by the
    #    EUP approximate-reciprocal softmax normalization).
    ctx_f32, probs = bert_self_attention_forward(
        x, attention_mask, wq, bq, wk, bk, wv, bv,
        num_heads=num_heads, compute_dtype=jnp.float32)
    ctx_f32 = jax.block_until_ready(ctx_f32)
    assert ctx_f32.shape == (batch, seq, hidden)
    assert probs is None
    assert jnp.allclose(ctx_f32, ref, atol=1e-2, rtol=1e-2), \
        "f32 shared-QKV kernel mismatch vs reference"

    # 2) Production path: bf16 MXU operands, f32 accumulation / softmax.
    ctx_bf16, _ = bert_self_attention_forward(
        x, attention_mask, wq, bq, wk, bk, wv, bv,
        num_heads=num_heads, compute_dtype=jnp.bfloat16)
    ctx_bf16 = jax.block_until_ready(ctx_bf16)
    assert jnp.allclose(ctx_bf16, ref, atol=7e-2, rtol=7e-2), \
        "bf16 shared-QKV kernel mismatch vs reference"

    # 3) General fused split-QKV path (not used by the module's forward, but
    #    exercised here against a proper-attention reference).
    ctx_split = bert_self_attention(
        x, attention_mask, wq, bq, wk, bk, wv, bv,
        num_heads=num_heads, shared_qkv=False, compute_dtype=jnp.float32)
    ctx_split = jax.block_until_ready(ctx_split)
    ref_split = _reference_attention_split(x, attention_mask, wq, bq, wk, bk,
                                           wv, bv, num_heads)
    assert jnp.allclose(ctx_split, ref_split, atol=1e-2, rtol=1e-2), \
        "fused split-QKV kernel mismatch vs reference"

    print("KERNEL_OK")
</pallas_src>

<mosaic_0001>
module attributes {stable_mosaic.version = 11 : i64} {
  func.func @_attention_kernel(%arg0: i32, %arg1: i32, %arg2: memref<1x8x32xf32, #tpu.memory_space<vmem>>, %arg3: memref<1x1x8xf32, #tpu.memory_space<vmem>>, %arg4: memref<32x32xf32, #tpu.memory_space<vmem>>, %arg5: memref<1x32xf32, #tpu.memory_space<vmem>>, %arg6: memref<1x8x32xf32, #tpu.memory_space<vmem>>) attributes {dimension_semantics = [#tpu.dimension_semantics<parallel>, #tpu.dimension_semantics<parallel>], iteration_bounds = array<i64: 2, 1>, scalar_prefetch = 0 : i64, scratch_operands = 0 : i64, tpu.core_type = #tpu.core_type<tc>, window_params = [{transform_indices = @transform_0, window_bounds = array<i64: 1, 8, 32>}, {transform_indices = @transform_1, window_bounds = array<i64: 1, 1, 8>}, {pipeline_mode = #tpu.pipeline_mode<synchronous>, transform_indices = @transform_2, window_bounds = array<i64: 32, 32>}, {pipeline_mode = #tpu.pipeline_mode<synchronous>, transform_indices = @transform_3, window_bounds = array<i64: 1, 32>}, {transform_indices = @transform_4, window_bounds = array<i64: 1, 8, 32>}]} {
    %c0 = arith.constant 0 : index
    %c0_0 = arith.constant 0 : index
    %c0_1 = arith.constant 0 : index
    %0 = vector.load %arg2[%c0, %c0_0, %c0_1] : memref<1x8x32xf32, #tpu.memory_space<vmem>>, vector<1x8x32xf32>
    %1 = vector.shape_cast %0 : vector<1x8x32xf32> to vector<8x32xf32>
    %c0_2 = arith.constant 0 : index
    %c0_3 = arith.constant 0 : index
    %2 = vector.load %arg4[%c0_2, %c0_3] : memref<32x32xf32, #tpu.memory_space<vmem>>, vector<32x32xf32>
    %cst = arith.constant dense<0.000000e+00> : vector<8x32xf32>
    %3 = tpu.matmul %1, %2, %cst {dimension_numbers = #tpu.dot_dimension_numbers<[1], [1], [0], [0], [0, 0, 1, 0], [], []>, precision = #tpu.contract_precision<fp32>} : vector<8x32xf32>, vector<32x32xf32>, vector<8x32xf32> -> vector<8x32xf32>
    %c0_4 = arith.constant 0 : index
    %c0_5 = arith.constant 0 : index
    %4 = vector.load %arg5[%c0_4, %c0_5] : memref<1x32xf32, #tpu.memory_space<vmem>>, vector<1x32xf32>
    %5 = vector.broadcast %4 : vector<1x32xf32> to vector<8x32xf32>
    %6 = arith.addf %3, %5 : vector<8x32xf32>
    %cst_6 = arith.constant 0.353553385 : f32
    %7 = vector.broadcast %cst_6 : f32 to vector<8x32xf32>
    %8 = arith.mulf %6, %7 : vector<8x32xf32>
    %c0_7 = arith.constant 0 : index
    %c0_8 = arith.constant 0 : index
    %c0_9 = arith.constant 0 : index
    %9 = vector.load %arg3[%c0_7, %c0_8, %c0_9] : memref<1x1x8xf32, #tpu.memory_space<vmem>>, vector<1x1x8xf32>
    %10 = vector.shape_cast %9 : vector<1x1x8xf32> to vector<1x8xf32>
    %11 = vector.extract_strided_slice %8 {offsets = [0, 0], sizes = [8, 8], strides = [1, 1]} : vector<8x32xf32> to vector<8x8xf32>
    %12 = vector.extract_strided_slice %6 {offsets = [0, 0], sizes = [8, 8], strides = [1, 1]} : vector<8x32xf32> to vector<8x8xf32>
    %13 = vector.extract_strided_slice %6 {offsets = [0, 0], sizes = [8, 8], strides = [1, 1]} : vector<8x32xf32> to vector<8x8xf32>
    %cst_10 = arith.constant dense<0.000000e+00> : vector<8x8xf32>
    %14 = tpu.matmul %11, %12, %cst_10 {dimension_numbers = #tpu.dot_dimension_numbers<[1], [1], [0], [0], [0, 0, 1, 0], [], []>, precision = #tpu.contract_precision<fp32>} : vector<8x8xf32>, vector<8x8xf32>, vector<8x8xf32> -> vector<8x8xf32>
    %15 = vector.broadcast %10 : vector<1x8xf32> to vector<8x8xf32>
    %16 = arith.addf %14, %15 : vector<8x8xf32>
    %cst_11 = arith.constant dense<0xFF800000> : vector<8xf32>
    %17 = vector.multi_reduction <maximumf>, %16, %cst_11 [1] : vector<8x8xf32> to vector<8xf32>
    %18 = vector.shape_cast %17 : vector<8xf32> to vector<8x1xf32>
    %19 = vector.broadcast %18 : vector<8x1xf32> to vector<8x8xf32>
    %20 = arith.subf %16, %19 : vector<8x8xf32>
    %21 = math.exp %20 : vector<8x8xf32>
    %cst_12 = arith.constant dense<0.000000e+00> : vector<8xf32>
    %22 = vector.multi_reduction <add>, %21, %cst_12 [1] : vector<8x8xf32> to vector<8xf32>
    %23 = vector.shape_cast %22 : vector<8xf32> to vector<8x1xf32>
    %24 = tpu.reciprocal %23 {approx = true} : vector<8x1xf32> -> vector<8x1xf32>
    %25 = vector.broadcast %24 : vector<8x1xf32> to vector<8x8xf32>
    %26 = arith.mulf %21, %25 : vector<8x8xf32>
    %cst_13 = arith.constant dense<0.000000e+00> : vector<8x8xf32>
    %27 = tpu.matmul %26, %13, %cst_13 {dimension_numbers = #tpu.dot_dimension_numbers<[1], [0], [0], [1], [0, 0, 1, 1], [], []>, precision = #tpu.contract_precision<fp32>} : vector<8x8xf32>, vector<8x8xf32>, vector<8x8xf32> -> vector<8x8xf32>
    %28 = vector.extract_strided_slice %8 {offsets = [0, 8], sizes = [8, 8], strides = [1, 1]} : vector<8x32xf32> to vector<8x8xf32>
    %29 = vector.extract_strided_slice %6 {offsets = [0, 8], sizes = [8, 8], strides = [1, 1]} : vector<8x32xf32> to vector<8x8xf32>
    %30 = vector.extract_strided_slice %6 {offsets = [0, 8], sizes = [8, 8], strides = [1, 1]} : vector<8x32xf32> to vector<8x8xf32>
    %cst_14 = arith.constant dense<0.000000e+00> : vector<8x8xf32>
    %31 = tpu.matmul %28, %29, %cst_14 {dimension_numbers = #tpu.dot_dimension_numbers<[1], [1], [0], [0], [0, 0, 1, 0], [], []>, precision = #tpu.contract_precision<fp32>} : vector<8x8xf32>, vector<8x8xf32>, vector<8x8xf32> -> vector<8x8xf32>
    %32 = vector.broadcast %10 : vector<1x8xf32> to vector<8x8xf32>
    %33 = arith.addf %31, %32 : vector<8x8xf32>
    %cst_15 = arith.constant dense<0xFF800000> : vector<8xf32>
    %34 = vector.multi_reduction <maximumf>, %33, %cst_15 [1] : vector<8x8xf32> to vector<8xf32>
    %35 = vector.shape_cast %34 : vector<8xf32> to vector<8x1xf32>
    %36 = vector.broadcast %35 : vector<8x1xf32> to vector<8x8xf32>
    %37 = arith.subf %33, %36 : vector<8x8xf32>
    %38 = math.exp %37 : vector<8x8xf32>
    %cst_16 = arith.constant dense<0.000000e+00> : vector<8xf32>
    %39 = vector.multi_reduction <add>, %38, %cst_16 [1] : vector<8x8xf32> to vector<8xf32>
    %40 = vector.shape_cast %39 : vector<8xf32> to vector<8x1xf32>
    %41 = tpu.reciprocal %40 {approx = true} : vector<8x1xf32> -> vector<8x1xf32>
    %42 = vector.broadcast %41 : vector<8x1xf32> to vector<8x8xf32>
    %43 = arith.mulf %38, %42 : vector<8x8xf32>
    %cst_17 = arith.constant dense<0.000000e+00> : vector<8x8xf32>
    %44 = tpu.matmul %43, %30, %cst_17 {dimension_numbers = #tpu.dot_dimension_numbers<[1], [0], [0], [1], [0, 0, 1, 1], [], []>, precision = #tpu.contract_precision<fp32>} : vector<8x8xf32>, vector<8x8xf32>, vector<8x8xf32> -> vector<8x8xf32>
    %45 = vector.extract_strided_slice %8 {offsets = [0, 16], sizes = [8, 8], strides = [1, 1]} : vector<8x32xf32> to vector<8x8xf32>
    %46 = vector.extract_strided_slice %6 {offsets = [0, 16], sizes = [8, 8], strides = [1, 1]} : vector<8x32xf32> to vector<8x8xf32>
    %47 = vector.extract_strided_slice %6 {offsets = [0, 16], sizes = [8, 8], strides = [1, 1]} : vector<8x32xf32> to vector<8x8xf32>
    %cst_18 = arith.constant dense<0.000000e+00> : vector<8x8xf32>
    %48 = tpu.matmul %45, %46, %cst_18 {dimension_numbers = #tpu.dot_dimension_numbers<[1], [1], [0], [0], [0, 0, 1, 0], [], []>, precision = #tpu.contract_precision<fp32>} : vector<8x8xf32>, vector<8x8xf32>, vector<8x8xf32> -> vector<8x8xf32>
    %49 = vector.broadcast %10 : vector<1x8xf32> to vector<8x8xf32>
    %50 = arith.addf %48, %49 : vector<8x8xf32>
    %cst_19 = arith.constant dense<0xFF800000> : vector<8xf32>
    %51 = vector.multi_reduction <maximumf>, %50, %cst_19 [1] : vector<8x8xf32> to vector<8xf32>
    %52 = vector.shape_cast %51 : vector<8xf32> to vector<8x1xf32>
    %53 = vector.broadcast %52 : vector<8x1xf32> to vector<8x8xf32>
    %54 = arith.subf %50, %53 : vector<8x8xf32>
    %55 = math.exp %54 : vector<8x8xf32>
    %cst_20 = arith.constant dense<0.000000e+00> : vector<8xf32>
    %56 = vector.multi_reduction <add>, %55, %cst_20 [1] : vector<8x8xf32> to vector<8xf32>
    %57 = vector.shape_cast %56 : vector<8xf32> to vector<8x1xf32>
    %58 = tpu.reciprocal %57 {approx = true} : vector<8x1xf32> -> vector<8x1xf32>
    %59 = vector.broadcast %58 : vector<8x1xf32> to vector<8x8xf32>
    %60 = arith.mulf %55, %59 : vector<8x8xf32>
    %cst_21 = arith.constant dense<0.000000e+00> : vector<8x8xf32>
    %61 = tpu.matmul %60, %47, %cst_21 {dimension_numbers = #tpu.dot_dimension_numbers<[1], [0], [0], [1], [0, 0, 1, 1], [], []>, precision = #tpu.contract_precision<fp32>} : vector<8x8xf32>, vector<8x8xf32>, vector<8x8xf32> -> vector<8x8xf32>
    %62 = vector.extract_strided_slice %8 {offsets = [0, 24], sizes = [8, 8], strides = [1, 1]} : vector<8x32xf32> to vector<8x8xf32>
    %63 = vector.extract_strided_slice %6 {offsets = [0, 24], sizes = [8, 8], strides = [1, 1]} : vector<8x32xf32> to vector<8x8xf32>
    %64 = vector.extract_strided_slice %6 {offsets = [0, 24], sizes = [8, 8], strides = [1, 1]} : vector<8x32xf32> to vector<8x8xf32>
    %cst_22 = arith.constant dense<0.000000e+00> : vector<8x8xf32>
    %65 = tpu.matmul %62, %63, %cst_22 {dimension_numbers = #tpu.dot_dimension_numbers<[1], [1], [0], [0], [0, 0, 1, 0], [], []>, precision = #tpu.contract_precision<fp32>} : vector<8x8xf32>, vector<8x8xf32>, vector<8x8xf32> -> vector<8x8xf32>
    %66 = vector.broadcast %10 : vector<1x8xf32> to vector<8x8xf32>
    %67 = arith.addf %65, %66 : vector<8x8xf32>
    %cst_23 = arith.constant dense<0xFF800000> : vector<8xf32>
    %68 = vector.multi_reduction <maximumf>, %67, %cst_23 [1] : vector<8x8xf32> to vector<8xf32>
    %69 = vector.shape_cast %68 : vector<8xf32> to vector<8x1xf32>
    %70 = vector.broadcast %69 : vector<8x1xf32> to vector<8x8xf32>
    %71 = arith.subf %67, %70 : vector<8x8xf32>
    %72 = math.exp %71 : vector<8x8xf32>
    %cst_24 = arith.constant dense<0.000000e+00> : vector<8xf32>
    %73 = vector.multi_reduction <add>, %72, %cst_24 [1] : vector<8x8xf32> to vector<8xf32>
    %74 = vector.shape_cast %73 : vector<8xf32> to vector<8x1xf32>
    %75 = tpu.reciprocal %74 {approx = true} : vector<8x1xf32> -> vector<8x1xf32>
    %76 = vector.broadcast %75 : vector<8x1xf32> to vector<8x8xf32>
    %77 = arith.mulf %72, %76 : vector<8x8xf32>
    %cst_25 = arith.constant dense<0.000000e+00> : vector<8x8xf32>
    %78 = tpu.matmul %77, %64, %cst_25 {dimension_numbers = #tpu.dot_dimension_numbers<[1], [0], [0], [1], [0, 0, 1, 1], [], []>, precision = #tpu.contract_precision<fp32>} : vector<8x8xf32>, vector<8x8xf32>, vector<8x8xf32> -> vector<8x8xf32>
    %79 = tpu.concatenate %27, %44 in 1 : vector<8x8xf32>, vector<8x8xf32> -> vector<8x16xf32>
    %80 = tpu.concatenate %61, %78 in 1 : vector<8x8xf32>, vector<8x8xf32> -> vector<8x16xf32>
    %81 = tpu.concatenate %79, %80 in 1 : vector<8x16xf32>, vector<8x16xf32> -> vector<8x32xf32>
    %c0_26 = arith.constant 0 : index
    %c0_27 = arith.constant 0 : index
    %c0_28 = arith.constant 0 : index
    %82 = vector.load %arg6[%c0_26, %c0_27, %c0_28] : memref<1x8x32xf32, #tpu.memory_space<vmem>>, vector<1x8x32xf32>
    %83 = vector.shape_cast %82 : vector<1x8x32xf32> to vector<8x32xf32>
    %84 = vector.shape_cast %81 : vector<8x32xf32> to vector<1x8x32xf32>
    tpu.vector_store %arg6[%c0_26, %c0_27, %c0_28], %84 {strides = array<i32>} : memref<1x8x32xf32, #tpu.memory_space<vmem>>, vector<1x8x32xf32>,
    return
  }
  func.func @transform_0(%arg0: i32, %arg1: i32) -> (i32, i32, i32) {
    %c0_i32 = arith.constant 0 : i32
    %c0_i32_0 = arith.constant 0 : i32
    %c0_i32_1 = arith.constant 0 : i32
    return %arg0, %c0_i32, %c0_i32_0 : i32, i32, i32
  }
  func.func @transform_1(%arg0: i32, %arg1: i32) -> (i32, i32, i32) {
    %c0_i32 = arith.constant 0 : i32
    %c0_i32_0 = arith.constant 0 : i32
    %c0_i32_1 = arith.constant 0 : i32
    return %arg0, %c0_i32, %c0_i32_0 : i32, i32, i32
  }
  func.func @transform_2(%arg0: i32, %arg1: i32) -> (i32, i32) {
    %c0_i32 = arith.constant 0 : i32
    %c0_i32_0 = arith.constant 0 : i32
    %c0_i32_1 = arith.constant 0 : i32
    return %c0_i32, %c0_i32_0 : i32, i32
  }
  func.func @transform_3(%arg0: i32, %arg1: i32) -> (i32, i32) {
    %c0_i32 = arith.constant 0 : i32
    %c0_i32_0 = arith.constant 0 : i32
    %c0_i32_1 = arith.constant 0 : i32
    return %c0_i32, %c0_i32_0 : i32, i32
  }
  func.func @transform_4(%arg0: i32, %arg1: i32) -> (i32, i32, i32) {
    %c0_i32 = arith.constant 0 : i32
    %c0_i32_0 = arith.constant 0 : i32
    return %arg0, %arg1, %c0_i32 : i32, i32, i32
  }
}

module attributes {stable_mosaic.version = 11 : i64} {
  func.func @_attention_kernel(%arg0: i32, %arg1: i32, %arg2: memref<1x8x32xf32, #tpu.memory_space<vmem>>, %arg3: memref<1x1x8xf32, #tpu.memory_space<vmem>>, %arg4: memref<32x32xf32, #tpu.memory_space<vmem>>, %arg5: memref<1x32xf32, #tpu.memory_space<vmem>>, %arg6: memref<1x8x32xf32, #tpu.memory_space<vmem>>) attributes {dimension_semantics = [#tpu.dimension_semantics<parallel>, #tpu.dimension_semantics<parallel>], iteration_bounds = array<i64: 2, 1>, scalar_prefetch = 0 : i64, scratch_operands = 0 : i64, tpu.core_type = #tpu.core_type<tc>, window_params = [{transform_indices = @transform_0, window_bounds = array<i64: 1, 8, 32>}, {transform_indices = @transform_1, window_bounds = array<i64: 1, 1, 8>}, {pipeline_mode = #tpu.pipeline_mode<synchronous>, transform_indices = @transform_2, window_bounds = array<i64: 32, 32>}, {pipeline_mode = #tpu.pipeline_mode<synchronous>, transform_indices = @transform_3, window_bounds = array<i64: 1, 32>}, {transform_indices = @transform_4, window_bounds = array<i64: 1, 8, 32>}]} {
    %c0 = arith.constant 0 : index
    %c0_0 = arith.constant 0 : index
    %c0_1 = arith.constant 0 : index
    %0 = vector.load %arg2[%c0, %c0_0, %c0_1] : memref<1x8x32xf32, #tpu.memory_space<vmem>>, vector<1x8x32xf32>
    %1 = vector.shape_cast %0 : vector<1x8x32xf32> to vector<8x32xf32>
    %c0_2 = arith.constant 0 : index
    %c0_3 = arith.constant 0 : index
    %2 = vector.load %arg4[%c0_2, %c0_3] : memref<32x32xf32, #tpu.memory_space<vmem>>, vector<32x32xf32>
    %cst = arith.constant dense<0.000000e+00> : vector<8x32xf32>
    %3 = tpu.matmul %1, %2, %cst {dimension_numbers = #tpu.dot_dimension_numbers<[1], [1], [0], [0], [0, 0, 1, 0], [], []>, precision = #tpu.contract_precision<fp32>} : vector<8x32xf32>, vector<32x32xf32>, vector<8x32xf32> -> vector<8x32xf32>
    %c0_4 = arith.constant 0 : index
    %c0_5 = arith.constant 0 : index
    %4 = vector.load %arg5[%c0_4, %c0_5] : memref<1x32xf32, #tpu.memory_space<vmem>>, vector<1x32xf32>
    %5 = vector.broadcast %4 : vector<1x32xf32> to vector<8x32xf32>
    %6 = arith.addf %3, %5 : vector<8x32xf32>
    %cst_6 = arith.constant 0.353553385 : f32
    %7 = vector.broadcast %cst_6 : f32 to vector<8x32xf32>
    %8 = arith.mulf %6, %7 : vector<8x32xf32>
    %c0_7 = arith.constant 0 : index
    %c0_8 = arith.constant 0 : index
    %c0_9 = arith.constant 0 : index
    %9 = vector.load %arg3[%c0_7, %c0_8, %c0_9] : memref<1x1x8xf32, #tpu.memory_space<vmem>>, vector<1x1x8xf32>
    %10 = vector.shape_cast %9 : vector<1x1x8xf32> to vector<1x8xf32>
    %11 = vector.extract_strided_slice %8 {offsets = [0, 0], sizes = [8, 8], strides = [1, 1]} : vector<8x32xf32> to vector<8x8xf32>
    %12 = vector.extract_strided_slice %6 {offsets = [0, 0], sizes = [8, 8], strides = [1, 1]} : vector<8x32xf32> to vector<8x8xf32>
    %13 = vector.extract_strided_slice %6 {offsets = [0, 0], sizes = [8, 8], strides = [1, 1]} : vector<8x32xf32> to vector<8x8xf32>
    %cst_10 = arith.constant dense<0.000000e+00> : vector<8x8xf32>
    %14 = tpu.matmul %11, %12, %cst_10 {dimension_numbers = #tpu.dot_dimension_numbers<[1], [1], [0], [0], [0, 0, 1, 0], [], []>, precision = #tpu.contract_precision<fp32>} : vector<8x8xf32>, vector<8x8xf32>, vector<8x8xf32> -> vector<8x8xf32>
    %15 = vector.broadcast %10 : vector<1x8xf32> to vector<8x8xf32>
    %16 = arith.addf %14, %15 : vector<8x8xf32>
    %cst_11 = arith.constant dense<0xFF800000> : vector<8xf32>
    %17 = vector.multi_reduction <maximumf>, %16, %cst_11 [1] : vector<8x8xf32> to vector<8xf32>
    %18 = vector.shape_cast %17 : vector<8xf32> to vector<8x1xf32>
    %19 = vector.broadcast %18 : vector<8x1xf32> to vector<8x8xf32>
    %20 = arith.subf %16, %19 : vector<8x8xf32>
    %21 = math.exp %20 : vector<8x8xf32>
    %cst_12 = arith.constant dense<0.000000e+00> : vector<8xf32>
    %22 = vector.multi_reduction <add>, %21, %cst_12 [1] : vector<8x8xf32> to vector<8xf32>
    %23 = vector.shape_cast %22 : vector<8xf32> to vector<8x1xf32>
    %24 = tpu.reciprocal %23 {approx = true} : vector<8x1xf32> -> vector<8x1xf32>
    %25 = vector.broadcast %24 : vector<8x1xf32> to vector<8x8xf32>
    %26 = arith.mulf %21, %25 : vector<8x8xf32>
    %cst_13 = arith.constant dense<0.000000e+00> : vector<8x8xf32>
    %27 = tpu.matmul %26, %13, %cst_13 {dimension_numbers = #tpu.dot_dimension_numbers<[1], [0], [0], [1], [0, 0, 1, 1], [], []>, precision = #tpu.contract_precision<fp32>} : vector<8x8xf32>, vector<8x8xf32>, vector<8x8xf32> -> vector<8x8xf32>
    %28 = vector.extract_strided_slice %8 {offsets = [0, 8], sizes = [8, 8], strides = [1, 1]} : vector<8x32xf32> to vector<8x8xf32>
    %29 = vector.extract_strided_slice %6 {offsets = [0, 8], sizes = [8, 8], strides = [1, 1]} : vector<8x32xf32> to vector<8x8xf32>
    %30 = vector.extract_strided_slice %6 {offsets = [0, 8], sizes = [8, 8], strides = [1, 1]} : vector<8x32xf32> to vector<8x8xf32>
    %cst_14 = arith.constant dense<0.000000e+00> : vector<8x8xf32>
    %31 = tpu.matmul %28, %29, %cst_14 {dimension_numbers = #tpu.dot_dimension_numbers<[1], [1], [0], [0], [0, 0, 1, 0], [], []>, precision = #tpu.contract_precision<fp32>} : vector<8x8xf32>, vector<8x8xf32>, vector<8x8xf32> -> vector<8x8xf32>
    %32 = vector.broadcast %10 : vector<1x8xf32> to vector<8x8xf32>
    %33 = arith.addf %31, %32 : vector<8x8xf32>
    %cst_15 = arith.constant dense<0xFF800000> : vector<8xf32>
    %34 = vector.multi_reduction <maximumf>, %33, %cst_15 [1] : vector<8x8xf32> to vector<8xf32>
    %35 = vector.shape_cast %34 : vector<8xf32> to vector<8x1xf32>
    %36 = vector.broadcast %35 : vector<8x1xf32> to vector<8x8xf32>
    %37 = arith.subf %33, %36 : vector<8x8xf32>
    %38 = math.exp %37 : vector<8x8xf32>
    %cst_16 = arith.constant dense<0.000000e+00> : vector<8xf32>
    %39 = vector.multi_reduction <add>, %38, %cst_16 [1] : vector<8x8xf32> to vector<8xf32>
    %40 = vector.shape_cast %39 : vector<8xf32> to vector<8x1xf32>
    %41 = tpu.reciprocal %40 {approx = true} : vector<8x1xf32> -> vector<8x1xf32>
    %42 = vector.broadcast %41 : vector<8x1xf32> to vector<8x8xf32>
    %43 = arith.mulf %38, %42 : vector<8x8xf32>
    %cst_17 = arith.constant dense<0.000000e+00> : vector<8x8xf32>
    %44 = tpu.matmul %43, %30, %cst_17 {dimension_numbers = #tpu.dot_dimension_numbers<[1], [0], [0], [1], [0, 0, 1, 1], [], []>, precision = #tpu.contract_precision<fp32>} : vector<8x8xf32>, vector<8x8xf32>, vector<8x8xf32> -> vector<8x8xf32>
    %45 = vector.extract_strided_slice %8 {offsets = [0, 16], sizes = [8, 8], strides = [1, 1]} : vector<8x32xf32> to vector<8x8xf32>
    %46 = vector.extract_strided_slice %6 {offsets = [0, 16], sizes = [8, 8], strides = [1, 1]} : vector<8x32xf32> to vector<8x8xf32>
    %47 = vector.extract_strided_slice %6 {offsets = [0, 16], sizes = [8, 8], strides = [1, 1]} : vector<8x32xf32> to vector<8x8xf32>
    %cst_18 = arith.constant dense<0.000000e+00> : vector<8x8xf32>
    %48 = tpu.matmul %45, %46, %cst_18 {dimension_numbers = #tpu.dot_dimension_numbers<[1], [1], [0], [0], [0, 0, 1, 0], [], []>, precision = #tpu.contract_precision<fp32>} : vector<8x8xf32>, vector<8x8xf32>, vector<8x8xf32> -> vector<8x8xf32>
    %49 = vector.broadcast %10 : vector<1x8xf32> to vector<8x8xf32>
    %50 = arith.addf %48, %49 : vector<8x8xf32>
    %cst_19 = arith.constant dense<0xFF800000> : vector<8xf32>
    %51 = vector.multi_reduction <maximumf>, %50, %cst_19 [1] : vector<8x8xf32> to vector<8xf32>
    %52 = vector.shape_cast %51 : vector<8xf32> to vector<8x1xf32>
    %53 = vector.broadcast %52 : vector<8x1xf32> to vector<8x8xf32>
    %54 = arith.subf %50, %53 : vector<8x8xf32>
    %55 = math.exp %54 : vector<8x8xf32>
    %cst_20 = arith.constant dense<0.000000e+00> : vector<8xf32>
    %56 = vector.multi_reduction <add>, %55, %cst_20 [1] : vector<8x8xf32> to vector<8xf32>
    %57 = vector.shape_cast %56 : vector<8xf32> to vector<8x1xf32>
    %58 = tpu.reciprocal %57 {approx = true} : vector<8x1xf32> -> vector<8x1xf32>
    %59 = vector.broadcast %58 : vector<8x1xf32> to vector<8x8xf32>
    %60 = arith.mulf %55, %59 : vector<8x8xf32>
    %cst_21 = arith.constant dense<0.000000e+00> : vector<8x8xf32>
    %61 = tpu.matmul %60, %47, %cst_21 {dimension_numbers = #tpu.dot_dimension_numbers<[1], [0], [0], [1], [0, 0, 1, 1], [], []>, precision = #tpu.contract_precision<fp32>} : vector<8x8xf32>, vector<8x8xf32>, vector<8x8xf32> -> vector<8x8xf32>
    %62 = vector.extract_strided_slice %8 {offsets = [0, 24], sizes = [8, 8], strides = [1, 1]} : vector<8x32xf32> to vector<8x8xf32>
    %63 = vector.extract_strided_slice %6 {offsets = [0, 24], sizes = [8, 8], strides = [1, 1]} : vector<8x32xf32> to vector<8x8xf32>
    %64 = vector.extract_strided_slice %6 {offsets = [0, 24], sizes = [8, 8], strides = [1, 1]} : vector<8x32xf32> to vector<8x8xf32>
    %cst_22 = arith.constant dense<0.000000e+00> : vector<8x8xf32>
    %65 = tpu.matmul %62, %63, %cst_22 {dimension_numbers = #tpu.dot_dimension_numbers<[1], [1], [0], [0], [0, 0, 1, 0], [], []>, precision = #tpu.contract_precision<fp32>} : vector<8x8xf32>, vector<8x8xf32>, vector<8x8xf32> -> vector<8x8xf32>
    %66 = vector.broadcast %10 : vector<1x8xf32> to vector<8x8xf32>
    %67 = arith.addf %65, %66 : vector<8x8xf32>
    %cst_23 = arith.constant dense<0xFF800000> : vector<8xf32>
    %68 = vector.multi_reduction <maximumf>, %67, %cst_23 [1] : vector<8x8xf32> to vector<8xf32>
    %69 = vector.shape_cast %68 : vector<8xf32> to vector<8x1xf32>
    %70 = vector.broadcast %69 : vector<8x1xf32> to vector<8x8xf32>
    %71 = arith.subf %67, %70 : vector<8x8xf32>
    %72 = math.exp %71 : vector<8x8xf32>
    %cst_24 = arith.constant dense<0.000000e+00> : vector<8xf32>
    %73 = vector.multi_reduction <add>, %72, %cst_24 [1] : vector<8x8xf32> to vector<8xf32>
    %74 = vector.shape_cast %73 : vector<8xf32> to vector<8x1xf32>
    %75 = tpu.reciprocal %74 {approx = true} : vector<8x1xf32> -> vector<8x1xf32>
    %76 = vector.broadcast %75 : vector<8x1xf32> to vector<8x8xf32>
    %77 = arith.mulf %72, %76 : vector<8x8xf32>
    %cst_25 = arith.constant dense<0.000000e+00> : vector<8x8xf32>
    %78 = tpu.matmul %77, %64, %cst_25 {dimension_numbers = #tpu.dot_dimension_numbers<[1], [0], [0], [1], [0, 0, 1, 1], [], []>, precision = #tpu.contract_precision<fp32>} : vector<8x8xf32>, vector<8x8xf32>, vector<8x8xf32> -> vector<8x8xf32>
    %79 = tpu.concatenate %27, %44 in 1 : vector<8x8xf32>, vector<8x8xf32> -> vector<8x16xf32>
    %80 = tpu.concatenate %61, %78 in 1 : vector<8x8xf32>, vector<8x8xf32> -> vector<8x16xf32>
    %81 = tpu.concatenate %79, %80 in 1 : vector<8x16xf32>, vector<8x16xf32> -> vector<8x32xf32>
    %c0_26 = arith.constant 0 : index
    %c0_27 = arith.constant 0 : index
    %c0_28 = arith.constant 0 : index
    %82 = vector.load %arg6[%c0_26, %c0_27, %c0_28] : memref<1x8x32xf32, #tpu.memory_space<vmem>>, vector<1x8x32xf32>
    %83 = vector.shape_cast %82 : vector<1x8x32xf32> to vector<8x32xf32>
    %84 = vector.shape_cast %81 : vector<8x32xf32> to vector<1x8x32xf32>
    tpu.vector_store %arg6[%c0_26, %c0_27, %c0_28], %84 {strides = array<i32>} : memref<1x8x32xf32, #tpu.memory_space<vmem>>, vector<1x8x32xf32>,
    return
  }
  func.func @transform_0(%arg0: i32, %arg1: i32) -> (i32, i32, i32) {
    %c0_i32 = arith.constant 0 : i32
    %c0_i32_0 = arith.constant 0 : i32
    %c0_i32_1 = arith.constant 0 : i32
    return %arg0, %c0_i32, %c0_i32_0 : i32, i32, i32
  }
  func.func @transform_1(%arg0: i32, %arg1: i32) -> (i32, i32, i32) {
    %c0_i32 = arith.constant 0 : i32
    %c0_i32_0 = arith.constant 0 : i32
    %c0_i32_1 = arith.constant 0 : i32
    return %arg0, %c0_i32, %c0_i32_0 : i32, i32, i32
  }
  func.func @transform_2(%arg0: i32, %arg1: i32) -> (i32, i32) {
    %c0_i32 = arith.constant 0 : i32
    %c0_i32_0 = arith.constant 0 : i32
    %c0_i32_1 = arith.constant 0 : i32
    return %c0_i32, %c0_i32_0 : i32, i32
  }
  func.func @transform_3(%arg0: i32, %arg1: i32) -> (i32, i32) {
    %c0_i32 = arith.constant 0 : i32
    %c0_i32_0 = arith.constant 0 : i32
    %c0_i32_1 = arith.constant 0 : i32
    return %c0_i32, %c0_i32_0 : i32, i32
  }
  func.func @transform_4(%arg0: i32, %arg1: i32) -> (i32, i32, i32) {
    %c0_i32 = arith.constant 0 : i32
    %c0_i32_0 = arith.constant 0 : i32
    return %arg0, %arg1, %c0_i32 : i32, i32, i32
  }
}

</mosaic_0001>

<bundles_post_ra>
// kernel: tpu_custom_call.1
= control target key start
LH: loop header
LB: loop body
LE: loop exit
PB: predicated region body
PF: predicated region fallthrough
CT: control target
= control target key end

     0   :  { %s2476_s0 = inlined_call_operand.hbm [shape: f32[2,8,32], index: 0, kind: input, shape index: {}]   ;;  %s2477_s1 = inlined_call_operand.hbm [shape: f32[2,1,8], index: 1, kind: input, shape index: {}]   ;;  %s2478_s2 = inlined_call_operand.hbm [shape: f32[32,32], index: 2, kind: input, shape index: {}]   ;;  %s2479_s3 = inlined_call_operand.vmem [shape: f32[1,32], index: 3, kind: input, shape index: {}]   ;;  %s2480_s4 = inlined_call_operand.hbm [shape: f32[2,8,32], index: 4, kind: output, shape index: {}]  }
   0x1   :  { %2484 = sst [smem:[#allocation17_spill]] %s2478_s2 }
   0x2   :  { %9 = vsyncpa [#allocation3], 0 }
   0x3   :  { %11 = vsyncpa [#allocation3 + $0x1], 0 }
   0x4   :  { %12 = vsyncpa [#allocation6], 0 }
   0x5   :  { %14 = vsyncpa [#allocation6 + $0x1], 0 }
   0x6   :  { %15 = vsyncpa [#allocation4], 0 }
   0x7   :  { %17 = vsyncpa [#allocation4 + $0x1], 0  ;;  %s2227_s15 = smov 0   ;;  %s2229_s16 = smov 0  }
   0x8   :  { %s2231_s17 = smov 0   ;;  %s2233_s18 = smov 0  }
   0x9   :  { %s2235_s19 = smov 0   ;;  %s2237_s20 = smov 0  }
   0xa LB: > { %2485 = sst [smem:[#allocation13_spill]] %s2180_s17  ;;  %s2258_s21 = sadd.s32 4294967295, %s2192_s20   ;;  %s2192_s20 = sphi %s2237_s20, %s23_s20   ;;  %s2188_s19 = sphi %s2235_s19, %s2502_s19   ;;  %s2184_s18 = sphi %s2233_s18, %s2501_s18   ;;  %s2180_s17 = sphi %s2231_s17, %s2497_s17   ;;  %s2176_s16 = sphi %s2229_s16, %s2500_s16   ;;  %s2172_s15 = sphi %s2227_s15, %s2499_s15  }
   0xb   : > { %p1896_p0 = scmp.ge.s32.totalorder %s2192_s20, 1  ;;  %p56_p1 = scmp.eq.s32.totalorder %s2258_s21, 0 }
   0xc   : > { %p162_p2 = scmp.lt.s32.totalorder %s2192_s20, 3  ;;  %s2486_s2 = sld [smem:[#allocation17_spill]] }
   0xd   : > { %s2194_s26 = smov [#allocation7]   ;;  %p1898_p6 = scmp.ge.s32.totalorder %s2192_s20, 2 }
   0xe   : > { %p2266_p3 = pnand %p1896_p0, %p162_p2  ;;  %s175_s27 = sshll.u32 %s2194_s26, 4  ;;  %s176_s27 = int_to_ptr.vmem [resolvable:$true] %s175_s27 }
   0xf   : > { %s2195_s28 = smov 128   ;;  %s2196_s29 = smov 8  }
  0x10   : > { %p1919_p4 = pneg %p2266_p3  ;;  %s1895_s30 = sadd.s32 4294967294, %s2192_s20  }
  0x11   : > { %s35_s5 = sadd.s32 1, %s2188_s19  ;;  %s42_s6 = sadd.s32 1, %s2180_s17 }
  0x12   : > { %s173_s24 = sshll.u32 %s2486_s2, 4  ;;  %p1920_p5 = pnand %p1919_p4, %p56_p1  ;;  %s174_s24 = int_to_ptr.hbm [resolvable:$true] %s173_s24 }
  0x13   : > { %p37_p7 = scmp.ge.s32.totalorder %s35_s5, 2  ;;  %p49_p8 = scmp.ne.s32.totalorder %s2180_s17, %s2176_s16 }
  0x14   : > { %1922 = dma.hbm_to_vmem [thread:$0]  (!%p1920_p5), %s174_s24, 512, %s176_s27, [#allocation6], %s2195_s28, %s2195_s28, %s2196_s29  }
  0x15   : > { %p50_p9 = scmp.eq.s32.totalorder %s2192_s20, 0  ;;  %p55_p10 = scmp.ne.s32.totalorder %s2176_s16, %s2172_s15 }
  0x16   : > { %s2504_s5 = smov (%p37_p7, %s35_s5), 0  ;;  %p149_p13 = scmp.eq.s32.totalorder %s2258_s21, 1 }
  0x17   : > { %2488 = sst [smem:[#allocation14_spill]] %s2504_s5  ;;  %p2285_p11 = por %p50_p9, %p49_p8 }
  0x18   : > { %p2291_p12 = por %p56_p1, %p55_p10  ;;  %s39_s9 = ssub.s32 %s2188_s19, %s2504_s5 }
  0x19   : > { %p40_p0 = scmp.eq.s32.totalorder %s39_s9, 0  ;;  %p155_p2 = scmp.eq.s32.totalorder %s1895_s30, 1 }
  0x1a   : > { %p2298_p4 = por %p149_p13, %p49_p8  ;;  %p1935_p5 = scmp.lt.s32.totalorder %s2192_s20, 2 }
  0x1b   : > { %s2304_s11 = scalar_select %p40_p0, %s2180_s17, %s42_s6  }
  0x1c   : > { %p2306_p7 = por %p155_p2, %p55_p10  ;;  %s192_s13 = sand.u32 1, %s2180_s17  }
  0x1d   : > { %2492 = sst [smem:[#allocation15_spill]] %s2304_s11  ;;  %s1899_s14 = sshll.u32 %s192_s13, 3 }
  0x1e   : > { %s2493_s12 = scalar_select %p2306_p7, 1, 0 }
  0x1f   : > { %s1900_s22 = sshll.u32 %s2188_s19, 3  ;;  %s196_s27 = scalar_lea.vmem [#allocation2], %s1899_s14 }
  0x20   : > { %2494 = sst [smem:[#allocation16_spill]] %s2493_s12  ;;  %s200_s26 = scalar_lea.hbm %s2476_s0, %s1900_s22 }
  0x21   : > { %s204_s28 = sshll.u32 %s196_s27, 4  ;;  %s202_s29 = sshll.u32 %s200_s26, 4  ;;  %s205_s28 = int_to_ptr.vmem [resolvable:$true] %s204_s28  ;;  %s203_s29 = int_to_ptr.hbm [resolvable:$true] %s202_s29 }
  0x22   : > { %p1924_p8 = pnand %p1935_p5, %p2285_p11  ;;  %s211_s30 = sand.u32 1, %s2192_s20  }
  0x23   : > { %s193_s6 = scalar_lea.sflag [#allocation3], %s192_s13  ;;  %s217_s5 = scalar_lea.hbm %s2477_s1, %s2188_s19 }
  0x24   : > { %1926 = dma.hbm_to_vmem [thread:$0]  (!%p1924_p8), %s203_s29, 128, %s205_s28, %s193_s6  }
  0x25   : > { %s214_s11 = scalar_lea.vmem [#allocation5], %s192_s13  ;;  %s219_s12 = sshll.u32 %s217_s5, 4  ;;  %s220_s12 = int_to_ptr.hbm [resolvable:$true] %s219_s12 }
  0x26   : > { %s221_s17 = sshll.u32 %s214_s11, 4  ;;  %s212_s22 = scalar_lea.sflag [#allocation6], %s211_s30  ;;  %s222_s17 = int_to_ptr.vmem [resolvable:$true] %s221_s17 }
  0x27   : > { %1929 = dma.hbm_to_vmem [thread:$0]  (!%p1924_p8), %s220_s12, 16, %s222_s17, %s212_s22  }
  0x28   : > { %230 = sbr.rel (%p2266_p3) target bundleno = 2266 (0x8da), region = 36  ;;  %s2325_s7 = sand.u32 (!%p2266_p3), 1, %s2176_s16  }
  0x29   : > { %s1902_s14 = sshll.u32 (!%p2266_p3), %s2325_s7, 3  ;;  %s233_s2 = scalar_lea.sflag (!%p2266_p3), [#allocation3], %s2325_s7 }
  0x2a   : > { %s236_s13 = scalar_lea.vmem (!%p2266_p3), [#allocation2], %s1902_s14 }
  0x2d   : > { %2155 = dma.done.wait (%p2291_p12), %s233_s2, 128  }
  0x2e   : > { %2157 = vsyncadd (%p2291_p12), %s233_s2, 4294967168  ;;  %s242_s17 = sand.u32 1, %s2258_s21   ;;  %s245_s5 = scalar_lea.vmem [#allocation5], %s2325_s7 }
  0x2f   : > { %s243_s25 = scalar_lea.sflag [#allocation6], %s242_s17 }
  0x30   : > { %2159 = dma.done.wait (%p2291_p12), %s243_s25, 16  }
  0x31   : > { %2161 = vsyncadd (%p2291_p12), %s243_s25, 4294967280 }
  0x32   : > { %2163 = dma.done.wait (%p56_p1), [#allocation6], 512  }
  0x33   : > { %2165 = vsyncadd (%p56_p1), [#allocation6], 4294966784  ;;  %vm289_vm0 = vcmask 261120   ;;  %v284_v0 = vld [vmem:[#allocation7 + $0x18] sm:$0xff]  ;;  %v283_v1 = vld [vmem:[#allocation7 + $0x10] sm:$0xff]  ;;  %vm495_vm1 = vcmask 64512  }
  0x34   : > { %v282_v2 = vld [vmem:[#allocation7 + $0x8] sm:$0xff]  ;;  %v303_v3 = vsel %vm289_vm0, %v284_v0, 0  ;;  %v300_v4 = vsel %vm289_vm0, %v283_v1, 0  ;;  %v281_v6 = vld [vmem:[#allocation7] sm:$0xff]  ;;  %s2197_s11 = smov 120   ;;  %s2198_s12 = smov 112  }
  0x35   : > { %v297_v5 = vsel %vm289_vm0, %v282_v2, 0  ;;  %v280_v7 = vld [vmem:[%s236_s13] sm:$0xff]  ;;  %v317_v8 = vand.u32 4294901760, %v303_v3  ;;  %v319_v9 = vand.u32 4294901760, %v300_v4  ;;  %v294_v11 = vsel %vm289_vm0, %v281_v6, 0  ;;  %s2199_s23 = smov 104  }
  0x36   : > { %v321_v10 = vand.u32 4294901760, %v297_v5  ;;  %v323_v12 = vand.u32 4294901760, %v294_v11  ;;  %v291_v13 = vsel %vm289_vm0, %v280_v7, 0  ;;  %v1994_v35 = vld [vmem:[%s2479_s3] ss:$0 sm:$0xff]  ;;  %s2200_s24 = smov 8  }
  0x37   : > { %318 = vmatpush.xpose.msra.mxu0 %v317_v8  ;;  %v347_v14 = vsub.f32 %v303_v3, %v317_v8  ;;  %418 = vmatpush.xpose.msra.mxu3 %v317_v8  ;;  %v353_v15 = vsub.f32 %v300_v4, %v319_v9  ;;  %v325_v17 = vand.u32 4294901760, %v291_v13  ;;  %s2201_s26 = smov 16   ;;  %s1906_s27 = sshll.u32 %s2184_s18, 3  ;;  %vm1767_vm2 = vcmask 130048  }
  0x38   : > { %v359_v16 = vsub.f32 %v297_v5, %v321_v10  ;;  %v365_v21 = vsub.f32 %v294_v11, %v323_v12  ;;  %s1782_s30 = scalar_lea.hbm %s2480_s4, %s1906_s27  ;;  %s279_s6 = scalar_lea.vmem [#allocation8], %s1902_s14 }
  0x39   : > { %v348_v18 = vand.u32 4294901760, %v347_v14  ;;  %389 = vmatpush.xpose.msra.mxu2 %v347_v14  ;;  %v354_v19 = vand.u32 4294901760, %v353_v15  ;;  %v326_v20 = vsub.f32 %v291_v13, %v325_v17  ;;  %s1784_s9 = sshll.u32 %s279_s6, 4  ;;  %s1786_s22 = sshll.u32 %s1782_s30, 4  ;;  %s1785_s9 = int_to_ptr.vmem [resolvable:$true] %s1784_s9  ;;  %s1787_s22 = int_to_ptr.hbm [resolvable:$true] %s1786_s22 }
  0x3a   : > { %v360_v24 = vand.u32 4294901760, %v359_v16  ;;  %v366_v30 = vand.u32 4294901760, %v365_v21  ;;  %s1771_s18 = scalar_lea.sflag [#allocation4], %s2325_s7  ;;  %s2116_s2 = sshra.s32 %s1787_s22, 4  ;;  %s2117_s2 = int_to_ptr.hbm [resolvable:$true] %s2116_s2 }
  0x3b   : > { %v349_v22 = vsub.f32 %v347_v14, %v348_v18  ;;  %320 = vmatpush.xpose.msra.mxu0 %v319_v9  ;;  %v355_v23 = vsub.f32 %v353_v15, %v354_v19  ;;  %420 = vmatpush.xpose.msra.mxu3 %v319_v9  ;;  %v327_v25 = vand.u32 4294901760, %v326_v20  ;;  %s2118_s13 = scalar_lea.hbm %s2117_s2, 8  ;;  %s2122_s25 = scalar_lea.hbm %s2480_s4, 16 }
  0x3c   : > { %v361_v29 = vsub.f32 %v359_v16, %v360_v24  ;;  %v367_v33 = vsub.f32 %v365_v21, %v366_v30  ;;  %p2119_p1 = scmp.ne.s32.totalorder %s2117_s2, %s2118_s13  ;;  %p2123_p10 = scmp.lt.s32.totalorder %s2117_s2, %s2480_s4 }
  0x3d   : > { %v350_v26 = vand.u32 4294901760, %v349_v22  ;;  %392 = vmatpush.xpose.msra.mxu2 %v353_v15  ;;  %v328_v27 = vsub.f32 %v326_v20, %v327_v25  ;;  %v356_v28 = vand.u32 4294901760, %v355_v23  ;;  %p2124_p11 = scmp.lt.s32.totalorder %s2122_s25, %s2118_s13 }
  0x3e   : > { %v362_v32 = vand.u32 4294901760, %v361_v29  ;;  %v368_v34 = vand.u32 4294901760, %v367_v33  ;;  %p2120_p3 = pnand %p2119_p1, %p2298_p4 }
  0x3f   : > { %351 = vmatpush.xpose.msra.mxu1 %v350_v26  ;;  %322 = vmatpush.xpose.msra.mxu0 %v321_v10  ;;  %v329_v31 = vand.u32 4294901760, %v328_v27  ;;  %p2125_p12 = por %p2124_p11, %p2123_p10 }
  0x40   : > { %422 = vmatpush.xpose.msra.mxu3 %v321_v10  ;;  %p2121_p9 = pneg %p2120_p3 }
  0x41   : > { %395 = vmatpush.xpose.msra.mxu2 %v359_v16 }
  0x42   : > { %p2126_p13 = pnand %p2125_p12, %p2121_p9 }
  0x43   : > { %357 = vmatpush.xpose.msra.mxu1 %v356_v28  ;;  %324 = vmatpush.xpose.msra.mxu0 %v323_v12 }
  0x44   : > { %424 = vmatpush.xpose.msra.mxu3 %v323_v12 }
  0x45   : > { %398 = vmatpush.xpose.msra.mxu2 %v365_v21 }
  0x46   : > { %330 = vmatmul.f32.vlgmr.msra.gmra.mxu0 %v329_v31 }
  0x47   : > { %447 = vmatpush.xpose.msrb.mxu0 %v348_v18  ;;  %363 = vmatpush.xpose.msra.mxu1 %v362_v32 }
  0x48   : > { %428 = vmatmul.f32.vlgmr.msra.gmra.mxu3 %v327_v25  ;;  %401 = vmatmul.f32.vlgmr.msra.gmra.mxu2 %v326_v20 }
  0x4b   : > { %451 = vmatpush.xpose.msrb.mxu0 %v354_v19  ;;  %369 = vmatpush.xpose.msra.mxu1 %v368_v34 }
  0x4e   : > { %371 = vmatmul.f32.vlgmr.msra.gmra.mxu1 %v325_v17 }
  0x4f   : > { %478 = vmatpush.xpose.msrb.mxu1 %v317_v8  ;;  %455 = vmatpush.xpose.msrb.mxu0 %v360_v24 }
  0x53   : > { %480 = vmatpush.xpose.msrb.mxu1 %v319_v9  ;;  %459 = vmatpush.xpose.msrb.mxu0 %v366_v30  ;;  %v2375_v9 = vld [vmem:[%s245_s5] ss:$0 sm:$0xff] }
  0x56   : > { %461 = vmatmul.f32.vlgmr.msrb.gmra.mxu0 %v325_v17 }
  0x57   : > { %482 = vmatpush.xpose.msrb.mxu1 %v321_v10 }
  0x5b   : > { %484 = vmatpush.xpose.msrb.mxu1 %v323_v12 }
  0x5e   : > { %486 = vmatmul.f32.vlgmr.msrb.gmra.mxu1 %v325_v17 }
  0xc3   : > { %v331_v36 = vpop.f32.mrf.mxu0 }
  0xc4   : > { %v332_v37 = vadd.f32 %v1994_v35, %v331_v36 }
  0xcb   : > { %v372_v38 = vpop.f32.mrf.mxu1  ;;  %v402_v39 = vpop.f32.mrf.mxu2 }
  0xcc   : > { %v373_v40 = vadd.f32 %v372_v38, %v332_v37  ;;  %v429_v42 = vpop.f32.mrf.mxu3 }
  0xce   : > { %v403_v41 = vadd.f32 %v402_v39, %v373_v40 }
  0xd0   : > { %v430_v43 = vadd.f32 %v429_v42, %v403_v41 }
  0xd3   : > { %v462_v44 = vpop.f32.mrf.mxu0 }
  0xd4   : > { %v463_v45 = vadd.f32 %v462_v44, %v430_v43 }
  0xdb   : > { %v487_v46 = vpop.f32.mrf.mxu1 }
  0xdc   : > { %v2353_v47 = vadd.f32 %v487_v46, %v463_v45 }
  0xde   : > { %810 = vrot.lane.b32.xlu1 %v2353_v47, %s2197_s11  ;;  %v500_v48 = vsel %vm495_vm1, %v2353_v47, 0  ;;  %v677_v49 = vand.u32 4294901760, %v2353_v47  ;;  %v2360_v50 = vmul.f32 0.35355338, %v2353_v47 }
  0xdf   : > { %v517_v51 = vand.u32 4294901760, %v500_v48 }
  0xe0   : > { %v497_v52 = vsel %vm495_vm1, %v2360_v50, 0  ;;  %v704_v53 = vsub.f32 %v2353_v47, %v677_v49 }
  0xe1   : > { %518 = vmatpush.xpose.msrb.mxu2 %v517_v51  ;;  %642 = vmatpush.xpose.msra.mxu1 %v517_v51  ;;  %v544_v54 = vsub.f32 %v500_v48, %v517_v51  ;;  %v519_v55 = vand.u32 4294901760, %v497_v52 }
  0xe2   : > { %v705_v58 = vand.u32 4294901760, %v704_v53 }
  0xe3   : > { %v545_v56 = vand.u32 4294901760, %v544_v54  ;;  %v520_v57 = vsub.f32 %v497_v52, %v519_v55 }
  0xe4   : > { %644 = vmatmul.f32.vlgmr.msra.gmra.mxu1 %v519_v55  ;;  %v706_v63 = vsub.f32 %v704_v53, %v705_v58 }
  0xe5   : > { %754 = vmatpush.msrb.mxu1 %v677_v49  ;;  %571 = vmatpush.xpose.msra.mxu2 %v544_v54  ;;  %v546_v59 = vsub.f32 %v544_v54, %v545_v56  ;;  %v521_v60 = vand.u32 4294901760, %v520_v57 }
  0xe6   : > { %620 = vmatpush.xpose.msra.mxu0 %v545_v56  ;;  %808 = vrot.lane.b32.xlu1 %v2360_v50, %s2197_s11  ;;  %v707_v1 = vand.u32 4294901760, %v706_v63 }
  0xe7   : > { %v547_v61 = vand.u32 4294901760, %v546_v59  ;;  %v522_v62 = vsub.f32 %v520_v57, %v521_v60 }
  0xe9   : > { %622 = vmatmul.f32.vlgmr.msra.gmra.mxu0 %v519_v55  ;;  %548 = vmatpush.xpose.msrb.mxu3 %v547_v61  ;;  %v523_v0 = vand.u32 4294901760, %v522_v62 }
  0xea   : > { %731 = vmatpush.msrb.mxu0 %v704_v53 }
  0xeb   : > { %524 = vmatmul.f32.vlgmr.msrb.gmra.mxu2 %v523_v0 }
  0xec   : > { %678 = vmatpush.msrb.mxu2 %v677_v49  ;;  %550 = vmatmul.f32.vlgmr.msrb.gmra.mxu3 %v519_v55 }
  0xed   : > { %594 = vmatpush.xpose.msra.mxu3 %v517_v51 }
  0xee   : > { %1123 = vrot.lane.b32.xlu1 %v2360_v50, %s2198_s12 }
  0xf1   : > { %708 = vmatpush.msrb.mxu3 %v707_v1 }
  0xf3   : > { %574 = vmatmul.f32.vlgmr.msra.gmra.mxu2 %v520_v57 }
  0xf4   : > { %780 = vmatpush.msra.mxu2 %v705_v58  ;;  %598 = vmatmul.f32.vlgmr.msra.gmra.mxu3 %v521_v60 }
  0xf5   : > { %802 = vmatpush.msra.mxu3 %v677_v49 }
 0x150   : > { %v811_v2 = vpop.permute.xlu1 %810 }
 0x151   : > { %v814_v3 = vsel %vm495_vm1, %v811_v2, 0  ;;  %v992_v31 = vand.u32 4294901760, %v811_v2 }
 0x152   : > { %v831_v4 = vand.u32 4294901760, %v814_v3 }
 0x153   : > { %v1019_v34 = vsub.f32 %v811_v2, %v992_v31 }
 0x154   : > { %v2369_v5 = vsub.f32 %v814_v3, %v831_v4  ;;  %832 = vmatpush.xpose.msra.mxu0 %v831_v4 }
 0x155   : > { %v1020_v39 = vand.u32 4294901760, %v1019_v34 }
 0x156   : > { %v859_v6 = vand.u32 4294901760, %v2369_v5 }
 0x157   : > { %v1021_v43 = vsub.f32 %v1019_v34, %v1020_v39 }
 0x158   : > { %v860_v7 = vsub.f32 %v2369_v5, %v859_v6  ;;  %v809_v28 = vpop.permute.xlu1 %808 }
 0x159   : > { %v812_v30 = vsel %vm495_vm1, %v809_v28, 0 }
 0x15a   : > { %v861_v8 = vand.u32 4294901760, %v860_v7  ;;  %v833_v32 = vand.u32 4294901760, %v812_v30 }
 0x15c   : > { %862 = vmatpush.xpose.msra.mxu1 %v861_v8  ;;  %v834_v36 = vsub.f32 %v812_v30, %v833_v32 }
 0x15e   : > { %v835_v40 = vand.u32 4294901760, %v834_v36 }
 0x160   : > { %v836_v44 = vsub.f32 %v834_v36, %v835_v40 }
 0x161   : > { %v645_v20 = vpop.f32.mrf.mxu1 }
 0x162   : > { %v837_v51 = vand.u32 4294901760, %v836_v44 }
 0x166   : > { %v623_v18 = vpop.f32.mrf.mxu0 }
 0x16e   : > { %v525_v10 = vpop.f32.mrf.mxu2 }
 0x16f   : > { %v551_v11 = vpop.f32.mrf.mxu3  ;;  %v526_v12 = vadd.f32 %v2375_v9, %v525_v10 }
 0x171   : > { %v552_v13 = vadd.f32 %v551_v11, %v526_v12 }
 0x176   : > { %v575_v14 = vpop.f32.mrf.mxu2 }
 0x177   : > { %v576_v15 = vadd.f32 %v575_v14, %v552_v13  ;;  %v599_v16 = vpop.f32.mrf.mxu3 }
 0x179   : > { %v600_v17 = vadd.f32 %v599_v16, %v576_v15 }
 0x17b   : > { %v624_v19 = vadd.f32 %v623_v18, %v600_v17 }
 0x17d   : > { %v646_v21 = vadd.f32 %v645_v20, %v624_v19 }
 0x17f   : > { %v648_v22 = vsel %vm495_vm1, %v646_v21, -inf }
 0x180   : > { %649 = vmax.xlane.f32.xlu0 %v648_v22 }
 0x1f3   : > { %v650_v23 = vpop.xlane.xlu0 %649 }
 0x1f4   : > { %v651_v24 = vsub.f32 %v646_v21, %v650_v23  ;;  %v1124_v23 = vpop.permute.xlu1 %1123 }
 0x1f6   : > { %v652_v25 = vmul.f32 1.442695, %v651_v24 }
 0x1f8   : > { %1996 = vpow2.f32 %v652_v25  ;;  %v1127_v25 = vsel %vm495_vm1, %v1124_v23, 0 }
 0x1fe   : > { %v1997_v26 = vpop.eup %1996 }
 0x1ff   : > { %v654_v27 = vsel %vm495_vm1, %v1997_v26, 0.0 }
 0x200   : > { %655 = vadd.xlane.f32.xlu0 %v654_v27  ;;  %v1148_v27 = vand.u32 4294901760, %v1127_v25 }
 0x214   : > { %1125 = vrot.lane.b32.xlu0 %v2353_v47, %s2198_s12 }
 0x21c   : > { %1438 = vrot.lane.b32.xlu0 %v2360_v50, %s2199_s23  ;;  %v1022_v50 = vand.u32 4294901760, %v1021_v43 }
 0x273   : > { %v656_v29 = vpop.xlane.xlu0 %655 }
 0x274   : > { %1998 = vrcp.f32 %v656_v29 }
 0x27a   : > { %v1999_v33 = vpop.eup %1998 }
 0x27b   : > { %v658_v35 = vmul.f32 %v1999_v33, %v1997_v26 }
 0x27d   : > { %v660_v37 = vsel %vm495_vm1, %v658_v35, 0 }
 0x27e   : > { %v679_v38 = vand.u32 4294901760, %v660_v37 }
 0x280   : > { %710 = vmatmul.f32.vlgmr.msrb.gmra.mxu3 %v679_v38  ;;  %v680_v41 = vsub.f32 %v660_v37, %v679_v38 }
 0x281   : > { %908 = vmatpush.xpose.msrb.mxu3 %v831_v4 }
 0x282   : > { %734 = vmatmul.f32.vlgmr.msrb.gmra.mxu0 %v680_v41  ;;  %v681_v42 = vand.u32 4294901760, %v680_v41 }
 0x283   : > { %934 = vmatpush.xpose.msrb.mxu0 %v859_v6 }
 0x284   : > { %758 = vmatmul.f32.vlgmr.msrb.gmra.mxu1 %v681_v42  ;;  %v682_v45 = vsub.f32 %v680_v41, %v681_v42 }
 0x285   : > { %956 = vmatpush.xpose.msrb.mxu1 %v831_v4 }
 0x286   : > { %v2386_v46 = vpop.permute.xlu0 %1125  ;;  %v683_v48 = vand.u32 4294901760, %v682_v45 }
 0x287   : > { %v1129_v49 = vsel %vm495_vm1, %v2386_v46, 0  ;;  %v1307_v26 = vand.u32 4294901760, %v2386_v46 }
 0x288   : > { %v2390_v52 = vand.u32 4294901760, %v1129_v49  ;;  %684 = vmatmul.f32.vlgmr.msrb.gmra.mxu2 %v683_v48  ;;  %804 = vmatmul.f32.vlgmr.msra.gmra.mxu3 %v679_v38 }
 0x289   : > { %885 = vmatpush.xpose.msrb.mxu2 %v2369_v5  ;;  %1023 = vmatpush.msra.mxu3 %v1022_v50  ;;  %v1334_v29 = vsub.f32 %v2386_v46, %v1307_v26 }
 0x28a   : > { %v2394_v53 = vsub.f32 %v1129_v49, %v2390_v52  ;;  %838 = vmatmul.f32.vlgmr.msra.gmra.mxu0 %v837_v51 }
 0x28b   : > { %1046 = vmatpush.msra.mxu0 %v1019_v34  ;;  %v1335_v34 = vand.u32 4294901760, %v1334_v29 }
 0x28c   : > { %v1174_v54 = vand.u32 4294901760, %v2394_v53  ;;  %864 = vmatmul.f32.vlgmr.msra.gmra.mxu1 %v833_v32 }
 0x28d   : > { %1069 = vmatpush.msra.mxu1 %v992_v31 }
 0x28e   : > { %v1175_v55 = vsub.f32 %v2394_v53, %v1174_v54 }
 0x290   : > { %782 = vmatmul.f32.vlgmr.msra.gmra.mxu2 %v679_v38  ;;  %912 = vmatmul.f32.vlgmr.msrb.gmra.mxu3 %v835_v40  ;;  %v1176_v56 = vand.u32 4294901760, %v1175_v55  ;;  %v1336_v38 = vsub.f32 %v1334_v29, %v1335_v34 }
 0x291   : > { %993 = vmatpush.msra.mxu2 %v992_v31  ;;  %1117 = vmatpush.msrb.mxu3 %v992_v31  ;;  %v1149_v31 = vsub.f32 %v1127_v25, %v1148_v27 }
 0x292   : > { %936 = vmatmul.f32.vlgmr.msrb.gmra.mxu0 %v833_v32  ;;  %v1337_v42 = vand.u32 4294901760, %v1336_v38 }
 0x293   : > { %1147 = vmatpush.xpose.msrb.mxu0 %v2390_v52  ;;  %v1150_v35 = vand.u32 4294901760, %v1149_v31 }
 0x294   : > { %958 = vmatmul.f32.vlgmr.msrb.gmra.mxu1 %v833_v32 }
 0x295   : > { %1177 = vmatpush.xpose.msrb.mxu1 %v1176_v56 }
 0x298   : > { %888 = vmatmul.f32.vlgmr.msrb.gmra.mxu2 %v834_v36 }
 0x299   : > { %1095 = vmatpush.msrb.mxu2 %v1020_v39  ;;  %v1151_v39 = vsub.f32 %v1149_v31, %v1150_v35 }
 0x29b   : > { %v1152_v43 = vand.u32 4294901760, %v1151_v39 }
 0x2ff   : > { %v735_v57 = vpop.f32.mrf.mxu0 }
 0x301   : > { %v759_v61 = vpop.f32.mrf.mxu1 }
 0x303   : > { %v711_v58 = vpop.f32.mrf.mxu3 }
 0x307   : > { %v839_v0 = vpop.f32.mrf.mxu0 }
 0x308   : > { %v840_v4 = vadd.f32 %v2375_v9, %v839_v0 }
 0x309   : > { %v865_v6 = vpop.f32.mrf.mxu1 }
 0x30a   : > { %v866_v7 = vadd.f32 %v865_v6, %v840_v4 }
 0x30b   : > { %v685_v59 = vpop.f32.mrf.mxu2  ;;  %v805_v1 = vpop.f32.mrf.mxu3 }
 0x30c   : > { %v712_v60 = vadd.f32 %v711_v58, %v685_v59 }
 0x30e   : > { %v736_v62 = vadd.f32 %v735_v57, %v712_v60 }
 0x30f   : > { %v937_v13 = vpop.f32.mrf.mxu0 }
 0x310   : > { %v760_v63 = vadd.f32 %v759_v61, %v736_v62 }
 0x311   : > { %v959_v15 = vpop.f32.mrf.mxu1 }
 0x313   : > { %v783_v2 = vpop.f32.mrf.mxu2  ;;  %v913_v11 = vpop.f32.mrf.mxu3 }
 0x314   : > { %v784_v3 = vadd.f32 %v783_v2, %v760_v63 }
 0x316   : > { %v2402_v5 = vadd.f32 %v805_v1, %v784_v3 }
 0x31b   : > { %v889_v8 = vpop.f32.mrf.mxu2 }
 0x31c   : > { %v890_v10 = vadd.f32 %v889_v8, %v866_v7 }
 0x31e   : > { %v914_v12 = vadd.f32 %v913_v11, %v890_v10 }
 0x320   : > { %v938_v14 = vadd.f32 %v937_v13, %v914_v12 }
 0x322   : > { %v960_v16 = vadd.f32 %v959_v15, %v938_v14 }
 0x324   : > { %v962_v17 = vsel %vm495_vm1, %v960_v16, -inf }
 0x325   : > { %963 = vmax.xlane.f32.xlu2 %v962_v17 }
 0x398   : > { %v964_v18 = vpop.xlane.xlu2 %963 }
 0x399   : > { %v965_v19 = vsub.f32 %v960_v16, %v964_v18 }
 0x39b   : > { %v966_v20 = vmul.f32 1.442695, %v965_v19  ;;  %v1439_v19 = vpop.permute.xlu0 %1438 }
 0x39d   : > { %2000 = vpow2.f32 %v966_v20  ;;  %v1442_v20 = vsel %vm495_vm1, %v1439_v19, 0 }
 0x3a3   : > { %v2001_v21 = vpop.eup %2000 }
 0x3a4   : > { %v968_v22 = vsel %vm495_vm1, %v2001_v21, 0.0 }
 0x3a5   : > { %969 = vadd.xlane.f32.xlu2 %v968_v22  ;;  %v1463_v22 = vand.u32 4294901760, %v1442_v20 }
 0x418   : > { %v970_v24 = vpop.xlane.xlu2 %969 }
 0x419   : > { %2002 = vrcp.f32 %v970_v24 }
 0x41f   : > { %v2003_v28 = vpop.eup %2002 }
 0x420   : > { %v972_v30 = vmul.f32 %v2003_v28, %v2001_v21 }
 0x422   : > { %v975_v32 = vsel %vm495_vm1, %v972_v30, 0 }
 0x423   : > { %v994_v33 = vand.u32 4294901760, %v975_v32 }
 0x425   : > { %1025 = vmatmul.f32.vlgmr.msra.gmra.mxu3 %v994_v33  ;;  %v995_v36 = vsub.f32 %v975_v32, %v994_v33 }
 0x426   : > { %1223 = vmatpush.xpose.msra.mxu3 %v2390_v52 }
 0x427   : > { %1049 = vmatmul.f32.vlgmr.msra.gmra.mxu0 %v995_v36  ;;  %v996_v37 = vand.u32 4294901760, %v995_v36 }
 0x428   : > { %1249 = vmatpush.xpose.msra.mxu0 %v1174_v54 }
 0x429   : > { %1073 = vmatmul.f32.vlgmr.msra.gmra.mxu1 %v996_v37  ;;  %v997_v40 = vsub.f32 %v995_v36, %v996_v37 }
 0x42a   : > { %1271 = vmatpush.xpose.msra.mxu1 %v2390_v52 }
 0x42b   : > { %v998_v41 = vand.u32 4294901760, %v997_v40 }
 0x42d   : > { %999 = vmatmul.f32.vlgmr.msra.gmra.mxu2 %v998_v41  ;;  %1119 = vmatmul.f32.vlgmr.msrb.gmra.mxu3 %v994_v33 }
 0x42e   : > { %1200 = vmatpush.xpose.msra.mxu2 %v2394_v53  ;;  %1338 = vmatpush.msrb.mxu3 %v1337_v42 }
 0x42f   : > { %1153 = vmatmul.f32.vlgmr.msrb.gmra.mxu0 %v1152_v43 }
 0x430   : > { %1361 = vmatpush.msrb.mxu0 %v1334_v29 }
 0x431   : > { %1179 = vmatmul.f32.vlgmr.msrb.gmra.mxu1 %v1148_v27 }
 0x432   : > { %1384 = vmatpush.msrb.mxu1 %v1307_v26 }
 0x435   : > { %1097 = vmatmul.f32.vlgmr.msrb.gmra.mxu2 %v994_v33  ;;  %1227 = vmatmul.f32.vlgmr.msra.gmra.mxu3 %v1150_v35 }
 0x436   : > { %1308 = vmatpush.msrb.mxu2 %v1307_v26  ;;  %1432 = vmatpush.msra.mxu3 %v1307_v26  ;;  %v1464_v26 = vsub.f32 %v1442_v20, %v1463_v22 }
 0x437   : > { %1251 = vmatmul.f32.vlgmr.msra.gmra.mxu0 %v1148_v27 }
 0x438   : > { %v1465_v30 = vand.u32 4294901760, %v1464_v26 }
 0x439   : > { %1273 = vmatmul.f32.vlgmr.msra.gmra.mxu1 %v1148_v27 }
 0x43d   : > { %1203 = vmatmul.f32.vlgmr.msra.gmra.mxu2 %v1149_v31 }
 0x43e   : > { %1410 = vmatpush.msra.mxu2 %v1335_v34  ;;  %v1466_v34 = vsub.f32 %v1464_v26, %v1465_v30 }
 0x440   : > { %v1467_v38 = vand.u32 4294901760, %v1466_v34 }
 0x4a4   : > { %v1050_v44 = vpop.f32.mrf.mxu0 }
 0x4a6   : > { %v1074_v49 = vpop.f32.mrf.mxu1 }
 0x4a8   : > { %v1026_v45 = vpop.f32.mrf.mxu3 }
 0x4ac   : > { %v1154_v52 = vpop.f32.mrf.mxu0 }
 0x4ad   : > { %v1155_v56 = vadd.f32 %v2375_v9, %v1154_v52 }
 0x4ae   : > { %v1180_v58 = vpop.f32.mrf.mxu1 }
 0x4af   : > { %v1181_v59 = vadd.f32 %v1180_v58, %v1155_v56 }
 0x4b0   : > { %v1000_v46 = vpop.f32.mrf.mxu2  ;;  %v1120_v53 = vpop.f32.mrf.mxu3 }
 0x4b1   : > { %v1027_v48 = vadd.f32 %v1026_v45, %v1000_v46 }
 0x4b3   : > { %v1051_v50 = vadd.f32 %v1050_v44, %v1027_v48 }
 0x4b4   : > { %v1252_v0 = vpop.f32.mrf.mxu0 }
 0x4b5   : > { %v1075_v51 = vadd.f32 %v1074_v49, %v1051_v50 }
 0x4b6   : > { %v1274_v2 = vpop.f32.mrf.mxu1 }
 0x4b8   : > { %v1098_v54 = vpop.f32.mrf.mxu2  ;;  %v1228_v62 = vpop.f32.mrf.mxu3 }
 0x4b9   : > { %v1099_v55 = vadd.f32 %v1098_v54, %v1075_v51 }
 0x4bb   : > { %v2416_v57 = vadd.f32 %v1120_v53, %v1099_v55 }
 0x4c0   : > { %v1204_v60 = vpop.f32.mrf.mxu2 }
 0x4c1   : > { %v1205_v61 = vadd.f32 %v1204_v60, %v1181_v59 }
 0x4c3   : > { %v1229_v63 = vadd.f32 %v1228_v62, %v1205_v61 }
 0x4c5   : > { %v1253_v1 = vadd.f32 %v1252_v0, %v1229_v63 }
 0x4c7   : > { %v1275_v3 = vadd.f32 %v1274_v2, %v1253_v1 }
 0x4c9   : > { %v1277_v4 = vsel %vm495_vm1, %v1275_v3, -inf }
 0x4ca   : > { %1278 = vmax.xlane.f32.xlu2 %v1277_v4 }
 0x4e2   : > { %1440 = vrot.lane.b32.xlu2 %v2353_v47, %s2199_s23 }
 0x53d   : > { %v1279_v6 = vpop.xlane.xlu2 %1278 }
 0x53e   : > { %v1280_v7 = vsub.f32 %v1275_v3, %v1279_v6 }
 0x540   : > { %v1281_v8 = vmul.f32 1.442695, %v1280_v7 }
 0x542   : > { %2004 = vpow2.f32 %v1281_v8 }
 0x545   : > { %v1441_v10 = vpop.permute.xlu2 %1440 }
 0x546   : > { %v1444_v11 = vsel %vm495_vm1, %v1441_v10, 0  ;;  %v1622_v21 = vand.u32 4294901760, %v1441_v10 }
 0x547   : > { %v1461_v12 = vand.u32 4294901760, %v1444_v11 }
 0x548   : > { %v2005_v13 = vpop.eup %2004  ;;  %v1649_v24 = vsub.f32 %v1441_v10, %v1622_v21 }
 0x549   : > { %v1488_v14 = vsub.f32 %v1444_v11, %v1461_v12  ;;  %1462 = vmatpush.xpose.msra.mxu0 %v1461_v12  ;;  %v1283_v15 = vsel %vm495_vm1, %v2005_v13, 0.0 }
 0x54a   : > { %1284 = vadd.xlane.f32.xlu1 %v1283_v15  ;;  %v1650_v29 = vand.u32 4294901760, %v1649_v24 }
 0x54b   : > { %v1489_v16 = vand.u32 4294901760, %v1488_v14 }
 0x54c   : > { %v1651_v33 = vsub.f32 %v1649_v24, %v1650_v29 }
 0x54d   : > { %v1490_v17 = vsub.f32 %v1488_v14, %v1489_v16 }
 0x54e   : > { %v1652_v37 = vand.u32 4294901760, %v1651_v33 }
 0x54f   : > { %v1491_v18 = vand.u32 4294901760, %v1490_v17 }
 0x551   : > { %1492 = vmatpush.xpose.msra.mxu1 %v1491_v18 }
 0x5bd   : > { %v1285_v47 = vpop.xlane.xlu1 %1284 }
 0x5be   : > { %2006 = vrcp.f32 %v1285_v47 }
 0x5c4   : > { %v2007_v23 = vpop.eup %2006 }
 0x5c5   : > { %v1287_v25 = vmul.f32 %v2007_v23, %v2005_v13 }
 0x5c7   : > { %v1290_v27 = vsel %vm495_vm1, %v1287_v25, 0 }
 0x5c8   : > { %v1309_v28 = vand.u32 4294901760, %v1290_v27 }
 0x5ca   : > { %1340 = vmatmul.f32.vlgmr.msrb.gmra.mxu3 %v1309_v28  ;;  %v1310_v31 = vsub.f32 %v1290_v27, %v1309_v28 }
 0x5cb   : > { %1538 = vmatpush.xpose.msrb.mxu3 %v1461_v12 }
 0x5cc   : > { %1364 = vmatmul.f32.vlgmr.msrb.gmra.mxu0 %v1310_v31  ;;  %v1311_v32 = vand.u32 4294901760, %v1310_v31 }
 0x5cd   : > { %1564 = vmatpush.xpose.msrb.mxu0 %v1489_v16 }
 0x5ce   : > { %1388 = vmatmul.f32.vlgmr.msrb.gmra.mxu1 %v1311_v32  ;;  %v1312_v35 = vsub.f32 %v1310_v31, %v1311_v32 }
 0x5cf   : > { %1586 = vmatpush.xpose.msrb.mxu1 %v1461_v12 }
 0x5d0   : > { %v1313_v36 = vand.u32 4294901760, %v1312_v35 }
 0x5d2   : > { %1314 = vmatmul.f32.vlgmr.msrb.gmra.mxu2 %v1313_v36  ;;  %1434 = vmatmul.f32.vlgmr.msra.gmra.mxu3 %v1309_v28 }
 0x5d3   : > { %1515 = vmatpush.xpose.msrb.mxu2 %v1488_v14  ;;  %1653 = vmatpush.msra.mxu3 %v1652_v37 }
 0x5d4   : > { %1468 = vmatmul.f32.vlgmr.msra.gmra.mxu0 %v1467_v38 }
 0x5d5   : > { %1676 = vmatpush.msra.mxu0 %v1649_v24 }
 0x5d6   : > { %1494 = vmatmul.f32.vlgmr.msra.gmra.mxu1 %v1463_v22 }
 0x5d7   : > { %1699 = vmatpush.msra.mxu1 %v1622_v21 }
 0x5da   : > { %1412 = vmatmul.f32.vlgmr.msra.gmra.mxu2 %v1309_v28  ;;  %1542 = vmatmul.f32.vlgmr.msrb.gmra.mxu3 %v1465_v30 }
 0x5db   : > { %1623 = vmatpush.msra.mxu2 %v1622_v21  ;;  %1747 = vmatpush.msrb.mxu3 %v1622_v21 }
 0x5dc   : > { %1566 = vmatmul.f32.vlgmr.msrb.gmra.mxu0 %v1463_v22 }
 0x5de   : > { %1588 = vmatmul.f32.vlgmr.msrb.gmra.mxu1 %v1463_v22 }
 0x5e2   : > { %1518 = vmatmul.f32.vlgmr.msrb.gmra.mxu2 %v1464_v26 }
 0x5e3   : > { %1725 = vmatpush.msrb.mxu2 %v1650_v29 }
 0x649   : > { %v1365_v39 = vpop.f32.mrf.mxu0 }
 0x64b   : > { %v1389_v43 = vpop.f32.mrf.mxu1 }
 0x64d   : > { %v1341_v40 = vpop.f32.mrf.mxu3 }
 0x651   : > { %v1469_v46 = vpop.f32.mrf.mxu0 }
 0x652   : > { %v1470_v51 = vadd.f32 %v2375_v9, %v1469_v46 }
 0x653   : > { %v1495_v53 = vpop.f32.mrf.mxu1 }
 0x654   : > { %v1496_v54 = vadd.f32 %v1495_v53, %v1470_v51 }
 0x655   : > { %v1315_v41 = vpop.f32.mrf.mxu2  ;;  %v1435_v48 = vpop.f32.mrf.mxu3 }
 0x656   : > { %v1342_v42 = vadd.f32 %v1341_v40, %v1315_v41 }
 0x658   : > { %v1366_v44 = vadd.f32 %v1365_v39, %v1342_v42 }
 0x659   : > { %v1567_v60 = vpop.f32.mrf.mxu0 }
 0x65a   : > { %v1390_v45 = vadd.f32 %v1389_v43, %v1366_v44 }
 0x65b   : > { %v1589_v62 = vpop.f32.mrf.mxu1 }
 0x65d   : > { %v1413_v49 = vpop.f32.mrf.mxu2  ;;  %v1543_v58 = vpop.f32.mrf.mxu3 }
 0x65e   : > { %v1414_v50 = vadd.f32 %v1413_v49, %v1390_v45 }
 0x660   : > { %v1436_v52 = vadd.f32 %v1435_v48, %v1414_v50 }
 0x665   : > { %v1519_v55 = vpop.f32.mrf.mxu2 }
 0x666   : > { %v1520_v56 = vadd.f32 %v1519_v55, %v1496_v54 }
 0x668   : > { %v1544_v59 = vadd.f32 %v1543_v58, %v1520_v56 }
 0x66a   : > { %v1568_v61 = vadd.f32 %v1567_v60, %v1544_v59 }
 0x66c   : > { %v1590_v63 = vadd.f32 %v1589_v62, %v1568_v61 }
 0x66e   : > { %v1592_v0 = vsel %vm495_vm1, %v1590_v63, -inf }
 0x66f   : > { %1593 = vmax.xlane.f32.xlu0 %v1592_v0 }
 0x683   : > { %1754 = vrot.lane.b32.xlu0 %v2416_v57, %s2200_s24 }
 0x6e2   : > { %v1594_v1 = vpop.xlane.xlu0 %1593 }
 0x6e3   : > { %v1595_v9 = vsub.f32 %v1590_v63, %v1594_v1 }
 0x6e5   : > { %v1596_v2 = vmul.f32 1.442695, %v1595_v9 }
 0x6e7   : > { %2008 = vpow2.f32 %v1596_v2 }
 0x6ed   : > { %v2009_v3 = vpop.eup %2008 }
 0x6ee   : > { %v1598_v4 = vsel %vm495_vm1, %v2009_v3, 0.0 }
 0x6ef   : > { %1599 = vadd.xlane.f32.xlu2 %v1598_v4 }
 0x6f5   : > { %v1755_v27 = vpop.permute.xlu0 %1754 }
 0x6f6   : > { %v1757_v28 = vsel %vm495_vm1, %v2402_v5, %v1755_v27 }
 0x762   : > { %v1600_v6 = vpop.xlane.xlu2 %1599 }
 0x763   : > { %2010 = vrcp.f32 %v1600_v6 }
 0x769   : > { %v2011_v7 = vpop.eup %2010 }
 0x76a   : > { %v1602_v8 = vmul.f32 %v2011_v7, %v2009_v3 }
 0x76c   : > { %v1605_v10 = vsel %vm495_vm1, %v1602_v8, 0 }
 0x76d   : > { %v1624_v11 = vand.u32 4294901760, %v1605_v10 }
 0x76f   : > { %1655 = vmatmul.f32.vlgmr.msra.gmra.mxu3 %v1624_v11  ;;  %v1625_v12 = vsub.f32 %v1605_v10, %v1624_v11 }
 0x771   : > { %1679 = vmatmul.f32.vlgmr.msra.gmra.mxu0 %v1625_v12  ;;  %v1626_v13 = vand.u32 4294901760, %v1625_v12 }
 0x773   : > { %1703 = vmatmul.f32.vlgmr.msra.gmra.mxu1 %v1626_v13  ;;  %v1627_v57 = vsub.f32 %v1625_v12, %v1626_v13 }
 0x775   : > { %v1628_v14 = vand.u32 4294901760, %v1627_v57 }
 0x777   : > { %1629 = vmatmul.f32.vlgmr.msra.gmra.mxu2 %v1628_v14  ;;  %1749 = vmatmul.f32.vlgmr.msrb.gmra.mxu3 %v1624_v11 }
 0x77f   : > { %1727 = vmatmul.f32.vlgmr.msrb.gmra.mxu2 %v1624_v11 }
 0x7ee   : > { %v1680_v18 = vpop.f32.mrf.mxu0 }
 0x7f0   : > { %v1704_v47 = vpop.f32.mrf.mxu1 }
 0x7f2   : > { %v1656_v15 = vpop.f32.mrf.mxu3 }
 0x7fa   : > { %v1630_v16 = vpop.f32.mrf.mxu2  ;;  %v1750_v23 = vpop.f32.mrf.mxu3 }
 0x7fb   : > { %v1657_v17 = vadd.f32 %v1656_v15, %v1630_v16 }
 0x7fd   : > { %v1681_v19 = vadd.f32 %v1680_v18, %v1657_v17 }
 0x7ff   : > { %v1705_v20 = vadd.f32 %v1704_v47, %v1681_v19 }
 0x802   : > { %v1728_v21 = vpop.f32.mrf.mxu2 }
 0x803   : > { %v1729_v22 = vadd.f32 %v1728_v21, %v1705_v20 }
 0x805   : > { %v1751_v24 = vadd.f32 %v1750_v23, %v1729_v22 }
 0x807   : > { %1759 = vrot.lane.b32.xlu1 %v1751_v24, %s2200_s24 }
 0x879   : > { %v1760_v25 = vpop.permute.xlu1 %1759 }
 0x87a   : > { %v1762_v26 = vsel %vm495_vm1, %v1436_v52, %v1760_v25 }
 0x87b   : > { %1764 = vrot.lane.b32.xlu2 %v1762_v26, %s2201_s26 }
 0x8d5   : > { %v1765_v29 = vpop.permute.xlu2 %1764 }
 0x8d6   : > { %v1768_v30 = vsel %vm1767_vm2, %v1757_v28, %v1765_v29 }
 0x8d7   : > { %1769 = vst.msk [vmem:[%s279_s6] sm:$0xff] %vm289_vm0, %v1768_v30 }
 0x8d8   : > { %2129 = shalt.err (!%p2126_p13)
}
 0x8d9   : > { %1917 = dma.vmem_to_hbm [thread:$0]  (%p2298_p4), %s1785_s9, 128, %s1787_s22, %s1771_s18  }
 0x8da PF: > { %s1798_s8 = sand.u32 1, %s2172_s15   ;;  %p1931_p0 = pnand %p1898_p6, %p2306_p7 }
 0x8db   : > { %s1799_s11 = scalar_lea.sflag [#allocation4], %s1798_s8 }
 0x8dc   : > { %p1932_p2 = pneg %p1931_p0 }
 0x8de   : > { %2167 = dma.done.wait (%p1932_p2), %s1799_s11, 128  }
 0x8df   : > { %2169 = vsyncadd (%p1932_p2), %s1799_s11, 4294967168  ;;  %s23_s20 = sadd.s32 1, %s2192_s20   ;;  %s2496_s12 = sld [smem:[#allocation13_spill]] }
 0x8e0   : > { %p20_p5 = scmp.ge.s32.totalorder %s23_s20, 4   ;;  %s2497_s17 = sld [smem:[#allocation15_spill]] }
 0x8e1   : > { %s2498_s10 = sld [smem:[#allocation14_spill]]  ;;  %s2499_s15 = smov %s2176_s16 }
 0x8e2   : > { %s2501_s18 = smov %s2188_s19 }
 0x8e3   :  { %22 = sbr.rel (!%p20_p5) target bundleno = 10 (0xa), region = 98 }
 0x8e5   : > { %s2500_s16 = smov %s2496_s12 }
 0x8e7   : > { %s2502_s19 = smov %s2498_s10 }
 0x8e8   :  { %1805 = vsyncpa [#allocation3], 1 }
 0x8e9   :  { %1807 = vsyncpa [#allocation3 + $0x1], 1 }
 0x8ea   :  { %1808 = vsyncpa [#allocation6], 1 }
 0x8eb   :  { %1810 = vsyncpa [#allocation6 + $0x1], 1 }
 0x8ec   :  { %1811 = vsyncpa [#allocation4], 1 }
 0x8ed   :  { %1813 = vsyncpa [#allocation4 + $0x1], 1 }

// kernel: tpu_custom_call.1
= control target key start
LH: loop header
LB: loop body
LE: loop exit
PB: predicated region body
PF: predicated region fallthrough
CT: control target
= control target key end

     0   :  { %s2476_s0 = inlined_call_operand.hbm [shape: f32[2,8,32], index: 0, kind: input, shape index: {}]   ;;  %s2477_s1 = inlined_call_operand.hbm [shape: f32[2,1,8], index: 1, kind: input, shape index: {}]   ;;  %s2478_s2 = inlined_call_operand.hbm [shape: f32[32,32], index: 2, kind: input, shape index: {}]   ;;  %s2479_s3 = inlined_call_operand.vmem [shape: f32[1,32], index: 3, kind: input, shape index: {}]   ;;  %s2480_s4 = inlined_call_operand.hbm [shape: f32[2,8,32], index: 4, kind: output, shape index: {}]  }
   0x1   :  { %2484 = sst [smem:[#allocation17_spill]] %s2478_s2 }
   0x2   :  { %9 = vsyncpa [#allocation3], 0 }
   0x3   :  { %11 = vsyncpa [#allocation3 + $0x1], 0 }
   0x4   :  { %12 = vsyncpa [#allocation6], 0 }
   0x5   :  { %14 = vsyncpa [#allocation6 + $0x1], 0 }
   0x6   :  { %15 = vsyncpa [#allocation4], 0 }
   0x7   :  { %17 = vsyncpa [#allocation4 + $0x1], 0  ;;  %s2227_s15 = smov 0   ;;  %s2229_s16 = smov 0  }
   0x8   :  { %s2231_s17 = smov 0   ;;  %s2233_s18 = smov 0  }
   0x9   :  { %s2235_s19 = smov 0   ;;  %s2237_s20 = smov 0  }
   0xa LB: > { %2485 = sst [smem:[#allocation13_spill]] %s2180_s17  ;;  %s2258_s21 = sadd.s32 4294967295, %s2192_s20   ;;  %s2192_s20 = sphi %s2237_s20, %s23_s20   ;;  %s2188_s19 = sphi %s2235_s19, %s2502_s19   ;;  %s2184_s18 = sphi %s2233_s18, %s2501_s18   ;;  %s2180_s17 = sphi %s2231_s17, %s2497_s17   ;;  %s2176_s16 = sphi %s2229_s16, %s2500_s16   ;;  %s2172_s15 = sphi %s2227_s15, %s2499_s15  }
   0xb   : > { %p1896_p0 = scmp.ge.s32.totalorder %s2192_s20, 1  ;;  %p56_p1 = scmp.eq.s32.totalorder %s2258_s21, 0 }
   0xc   : > { %p162_p2 = scmp.lt.s32.totalorder %s2192_s20, 3  ;;  %s2486_s2 = sld [smem:[#allocation17_spill]] }
   0xd   : > { %s2194_s26 = smov [#allocation7]   ;;  %p1898_p6 = scmp.ge.s32.totalorder %s2192_s20, 2 }
   0xe   : > { %p2266_p3 = pnand %p1896_p0, %p162_p2  ;;  %s175_s27 = sshll.u32 %s2194_s26, 4  ;;  %s176_s27 = int_to_ptr.vmem [resolvable:$true] %s175_s27 }
   0xf   : > { %s2195_s28 = smov 128   ;;  %s2196_s29 = smov 8  }
  0x10   : > { %p1919_p4 = pneg %p2266_p3  ;;  %s1895_s30 = sadd.s32 4294967294, %s2192_s20  }
  0x11   : > { %s35_s5 = sadd.s32 1, %s2188_s19  ;;  %s42_s6 = sadd.s32 1, %s2180_s17 }
  0x12   : > { %s173_s24 = sshll.u32 %s2486_s2, 4  ;;  %p1920_p5 = pnand %p1919_p4, %p56_p1  ;;  %s174_s24 = int_to_ptr.hbm [resolvable:$true] %s173_s24 }
  0x13   : > { %p37_p7 = scmp.ge.s32.totalorder %s35_s5, 2  ;;  %p49_p8 = scmp.ne.s32.totalorder %s2180_s17, %s2176_s16 }
  0x14   : > { %1922 = dma.hbm_to_vmem [thread:$0]  (!%p1920_p5), %s174_s24, 512, %s176_s27, [#allocation6], %s2195_s28, %s2195_s28, %s2196_s29  }
  0x15   : > { %p50_p9 = scmp.eq.s32.totalorder %s2192_s20, 0  ;;  %p55_p10 = scmp.ne.s32.totalorder %s2176_s16, %s2172_s15 }
  0x16   : > { %s2504_s5 = smov (%p37_p7, %s35_s5), 0  ;;  %p149_p13 = scmp.eq.s32.totalorder %s2258_s21, 1 }
  0x17   : > { %2488 = sst [smem:[#allocation14_spill]] %s2504_s5  ;;  %p2285_p11 = por %p50_p9, %p49_p8 }
  0x18   : > { %p2291_p12 = por %p56_p1, %p55_p10  ;;  %s39_s9 = ssub.s32 %s2188_s19, %s2504_s5 }
  0x19   : > { %p40_p0 = scmp.eq.s32.totalorder %s39_s9, 0  ;;  %p155_p2 = scmp.eq.s32.totalorder %s1895_s30, 1 }
  0x1a   : > { %p2298_p4 = por %p149_p13, %p49_p8  ;;  %p1935_p5 = scmp.lt.s32.totalorder %s2192_s20, 2 }
  0x1b   : > { %s2304_s11 = scalar_select %p40_p0, %s2180_s17, %s42_s6  }
  0x1c   : > { %p2306_p7 = por %p155_p2, %p55_p10  ;;  %s192_s13 = sand.u32 1, %s2180_s17  }
  0x1d   : > { %2492 = sst [smem:[#allocation15_spill]] %s2304_s11  ;;  %s1899_s14 = sshll.u32 %s192_s13, 3 }
  0x1e   : > { %s2493_s12 = scalar_select %p2306_p7, 1, 0 }
  0x1f   : > { %s1900_s22 = sshll.u32 %s2188_s19, 3  ;;  %s196_s27 = scalar_lea.vmem [#allocation2], %s1899_s14 }
  0x20   : > { %2494 = sst [smem:[#allocation16_spill]] %s2493_s12  ;;  %s200_s26 = scalar_lea.hbm %s2476_s0, %s1900_s22 }
  0x21   : > { %s204_s28 = sshll.u32 %s196_s27, 4  ;;  %s202_s29 = sshll.u32 %s200_s26, 4  ;;  %s205_s28 = int_to_ptr.vmem [resolvable:$true] %s204_s28  ;;  %s203_s29 = int_to_ptr.hbm [resolvable:$true] %s202_s29 }
  0x22   : > { %p1924_p8 = pnand %p1935_p5, %p2285_p11  ;;  %s211_s30 = sand.u32 1, %s2192_s20  }
  0x23   : > { %s193_s6 = scalar_lea.sflag [#allocation3], %s192_s13  ;;  %s217_s5 = scalar_lea.hbm %s2477_s1, %s2188_s19 }
  0x24   : > { %1926 = dma.hbm_to_vmem [thread:$0]  (!%p1924_p8), %s203_s29, 128, %s205_s28, %s193_s6  }
  0x25   : > { %s214_s11 = scalar_lea.vmem [#allocation5], %s192_s13  ;;  %s219_s12 = sshll.u32 %s217_s5, 4  ;;  %s220_s12 = int_to_ptr.hbm [resolvable:$true] %s219_s12 }
  0x26   : > { %s221_s17 = sshll.u32 %s214_s11, 4  ;;  %s212_s22 = scalar_lea.sflag [#allocation6], %s211_s30  ;;  %s222_s17 = int_to_ptr.vmem [resolvable:$true] %s221_s17 }
  0x27   : > { %1929 = dma.hbm_to_vmem [thread:$0]  (!%p1924_p8), %s220_s12, 16, %s222_s17, %s212_s22  }
  0x28   : > { %230 = sbr.rel (%p2266_p3) target bundleno = 2266 (0x8da), region = 36  ;;  %s2325_s7 = sand.u32 (!%p2266_p3), 1, %s2176_s16  }
  0x29   : > { %s1902_s14 = sshll.u32 (!%p2266_p3), %s2325_s7, 3  ;;  %s233_s2 = scalar_lea.sflag (!%p2266_p3), [#allocation3], %s2325_s7 }
  0x2a   : > { %s236_s13 = scalar_lea.vmem (!%p2266_p3), [#allocation2], %s1902_s14 }
  0x2d   : > { %2155 = dma.done.wait (%p2291_p12), %s233_s2, 128  }
  0x2e   : > { %2157 = vsyncadd (%p2291_p12), %s233_s2, 4294967168  ;;  %s242_s17 = sand.u32 1, %s2258_s21   ;;  %s245_s5 = scalar_lea.vmem [#allocation5], %s2325_s7 }
  0x2f   : > { %s243_s25 = scalar_lea.sflag [#allocation6], %s242_s17 }
  0x30   : > { %2159 = dma.done.wait (%p2291_p12), %s243_s25, 16  }
  0x31   : > { %2161 = vsyncadd (%p2291_p12), %s243_s25, 4294967280 }
  0x32   : > { %2163 = dma.done.wait (%p56_p1), [#allocation6], 512  }
  0x33   : > { %2165 = vsyncadd (%p56_p1), [#allocation6], 4294966784  ;;  %vm289_vm0 = vcmask 261120   ;;  %v284_v0 = vld [vmem:[#allocation7 + $0x18] sm:$0xff]  ;;  %v283_v1 = vld [vmem:[#allocation7 + $0x10] sm:$0xff]  ;;  %vm495_vm1 = vcmask 64512  }
  0x34   : > { %v282_v2 = vld [vmem:[#allocation7 + $0x8] sm:$0xff]  ;;  %v303_v3 = vsel %vm289_vm0, %v284_v0, 0  ;;  %v300_v4 = vsel %vm289_vm0, %v283_v1, 0  ;;  %v281_v6 = vld [vmem:[#allocation7] sm:$0xff]  ;;  %s2197_s11 = smov 120   ;;  %s2198_s12 = smov 112  }
  0x35   : > { %v297_v5 = vsel %vm289_vm0, %v282_v2, 0  ;;  %v280_v7 = vld [vmem:[%s236_s13] sm:$0xff]  ;;  %v317_v8 = vand.u32 4294901760, %v303_v3  ;;  %v319_v9 = vand.u32 4294901760, %v300_v4  ;;  %v294_v11 = vsel %vm289_vm0, %v281_v6, 0  ;;  %s2199_s23 = smov 104  }
  0x36   : > { %v321_v10 = vand.u32 4294901760, %v297_v5  ;;  %v323_v12 = vand.u32 4294901760, %v294_v11  ;;  %v291_v13 = vsel %vm289_vm0, %v280_v7, 0  ;;  %v1994_v35 = vld [vmem:[%s2479_s3] ss:$0 sm:$0xff]  ;;  %s2200_s24 = smov 8  }
  0x37   : > { %318 = vmatpush.xpose.msra.mxu0 %v317_v8  ;;  %v347_v14 = vsub.f32 %v303_v3, %v317_v8  ;;  %418 = vmatpush.xpose.msra.mxu3 %v317_v8  ;;  %v353_v15 = vsub.f32 %v300_v4, %v319_v9  ;;  %v325_v17 = vand.u32 4294901760, %v291_v13  ;;  %s2201_s26 = smov 16   ;;  %s1906_s27 = sshll.u32 %s2184_s18, 3  ;;  %vm1767_vm2 = vcmask 130048  }
  0x38   : > { %v359_v16 = vsub.f32 %v297_v5, %v321_v10  ;;  %v365_v21 = vsub.f32 %v294_v11, %v323_v12  ;;  %s1782_s30 = scalar_lea.hbm %s2480_s4, %s1906_s27  ;;  %s279_s6 = scalar_lea.vmem [#allocation8], %s1902_s14 }
  0x39   : > { %v348_v18 = vand.u32 4294901760, %v347_v14  ;;  %389 = vmatpush.xpose.msra.mxu2 %v347_v14  ;;  %v354_v19 = vand.u32 4294901760, %v353_v15  ;;  %v326_v20 = vsub.f32 %v291_v13, %v325_v17  ;;  %s1784_s9 = sshll.u32 %s279_s6, 4  ;;  %s1786_s22 = sshll.u32 %s1782_s30, 4  ;;  %s1785_s9 = int_to_ptr.vmem [resolvable:$true] %s1784_s9  ;;  %s1787_s22 = int_to_ptr.hbm [resolvable:$true] %s1786_s22 }
  0x3a   : > { %v360_v24 = vand.u32 4294901760, %v359_v16  ;;  %v366_v30 = vand.u32 4294901760, %v365_v21  ;;  %s1771_s18 = scalar_lea.sflag [#allocation4], %s2325_s7  ;;  %s2116_s2 = sshra.s32 %s1787_s22, 4  ;;  %s2117_s2 = int_to_ptr.hbm [resolvable:$true] %s2116_s2 }
  0x3b   : > { %v349_v22 = vsub.f32 %v347_v14, %v348_v18  ;;  %320 = vmatpush.xpose.msra.mxu0 %v319_v9  ;;  %v355_v23 = vsub.f32 %v353_v15, %v354_v19  ;;  %420 = vmatpush.xpose.msra.mxu3 %v319_v9  ;;  %v327_v25 = vand.u32 4294901760, %v326_v20  ;;  %s2118_s13 = scalar_lea.hbm %s2117_s2, 8  ;;  %s2122_s25 = scalar_lea.hbm %s2480_s4, 16 }
  0x3c   : > { %v361_v29 = vsub.f32 %v359_v16, %v360_v24  ;;  %v367_v33 = vsub.f32 %v365_v21, %v366_v30  ;;  %p2119_p1 = scmp.ne.s32.totalorder %s2117_s2, %s2118_s13  ;;  %p2123_p10 = scmp.lt.s32.totalorder %s2117_s2, %s2480_s4 }
  0x3d   : > { %v350_v26 = vand.u32 4294901760, %v349_v22  ;;  %392 = vmatpush.xpose.msra.mxu2 %v353_v15  ;;  %v328_v27 = vsub.f32 %v326_v20, %v327_v25  ;;  %v356_v28 = vand.u32 4294901760, %v355_v23  ;;  %p2124_p11 = scmp.lt.s32.totalorder %s2122_s25, %s2118_s13 }
  0x3e   : > { %v362_v32 = vand.u32 4294901760, %v361_v29  ;;  %v368_v34 = vand.u32 4294901760, %v367_v33  ;;  %p2120_p3 = pnand %p2119_p1, %p2298_p4 }
  0x3f   : > { %351 = vmatpush.xpose.msra.mxu1 %v350_v26  ;;  %322 = vmatpush.xpose.msra.mxu0 %v321_v10  ;;  %v329_v31 = vand.u32 4294901760, %v328_v27  ;;  %p2125_p12 = por %p2124_p11, %p2123_p10 }
  0x40   : > { %422 = vmatpush.xpose.msra.mxu3 %v321_v10  ;;  %p2121_p9 = pneg %p2120_p3 }
  0x41   : > { %395 = vmatpush.xpose.msra.mxu2 %v359_v16 }
  0x42   : > { %p2126_p13 = pnand %p2125_p12, %p2121_p9 }
  0x43   : > { %357 = vmatpush.xpose.msra.mxu1 %v356_v28  ;;  %324 = vmatpush.xpose.msra.mxu0 %v323_v12 }
  0x44   : > { %424 = vmatpush.xpose.msra.mxu3 %v323_v12 }
  0x45   : > { %398 = vmatpush.xpose.msra.mxu2 %v365_v21 }
  0x46   : > { %330 = vmatmul.f32.vlgmr.msra.gmra.mxu0 %v329_v31 }
  0x47   : > { %447 = vmatpush.xpose.msrb.mxu0 %v348_v18  ;;  %363 = vmatpush.xpose.msra.mxu1 %v362_v32 }
  0x48   : > { %428 = vmatmul.f32.vlgmr.msra.gmra.mxu3 %v327_v25  ;;  %401 = vmatmul.f32.vlgmr.msra.gmra.mxu2 %v326_v20 }
  0x4b   : > { %451 = vmatpush.xpose.msrb.mxu0 %v354_v19  ;;  %369 = vmatpush.xpose.msra.mxu1 %v368_v34 }
  0x4e   : > { %371 = vmatmul.f32.vlgmr.msra.gmra.mxu1 %v325_v17 }
  0x4f   : > { %478 = vmatpush.xpose.msrb.mxu1 %v317_v8  ;;  %455 = vmatpush.xpose.msrb.mxu0 %v360_v24 }
  0x53   : > { %480 = vmatpush.xpose.msrb.mxu1 %v319_v9  ;;  %459 = vmatpush.xpose.msrb.mxu0 %v366_v30  ;;  %v2375_v9 = vld [vmem:[%s245_s5] ss:$0 sm:$0xff] }
  0x56   : > { %461 = vmatmul.f32.vlgmr.msrb.gmra.mxu0 %v325_v17 }
  0x57   : > { %482 = vmatpush.xpose.msrb.mxu1 %v321_v10 }
  0x5b   : > { %484 = vmatpush.xpose.msrb.mxu1 %v323_v12 }
  0x5e   : > { %486 = vmatmul.f32.vlgmr.msrb.gmra.mxu1 %v325_v17 }
  0xc3   : > { %v331_v36 = vpop.f32.mrf.mxu0 }
  0xc4   : > { %v332_v37 = vadd.f32 %v1994_v35, %v331_v36 }
  0xcb   : > { %v372_v38 = vpop.f32.mrf.mxu1  ;;  %v402_v39 = vpop.f32.mrf.mxu2 }
  0xcc   : > { %v373_v40 = vadd.f32 %v372_v38, %v332_v37  ;;  %v429_v42 = vpop.f32.mrf.mxu3 }
  0xce   : > { %v403_v41 = vadd.f32 %v402_v39, %v373_v40 }
  0xd0   : > { %v430_v43 = vadd.f32 %v429_v42, %v403_v41 }
  0xd3   : > { %v462_v44 = vpop.f32.mrf.mxu0 }
  0xd4   : > { %v463_v45 = vadd.f32 %v462_v44, %v430_v43 }
  0xdb   : > { %v487_v46 = vpop.f32.mrf.mxu1 }
  0xdc   : > { %v2353_v47 = vadd.f32 %v487_v46, %v463_v45 }
  0xde   : > { %810 = vrot.lane.b32.xlu1 %v2353_v47, %s2197_s11  ;;  %v500_v48 = vsel %vm495_vm1, %v2353_v47, 0  ;;  %v677_v49 = vand.u32 4294901760, %v2353_v47  ;;  %v2360_v50 = vmul.f32 0.35355338, %v2353_v47 }
  0xdf   : > { %v517_v51 = vand.u32 4294901760, %v500_v48 }
  0xe0   : > { %v497_v52 = vsel %vm495_vm1, %v2360_v50, 0  ;;  %v704_v53 = vsub.f32 %v2353_v47, %v677_v49 }
  0xe1   : > { %518 = vmatpush.xpose.msrb.mxu2 %v517_v51  ;;  %642 = vmatpush.xpose.msra.mxu1 %v517_v51  ;;  %v544_v54 = vsub.f32 %v500_v48, %v517_v51  ;;  %v519_v55 = vand.u32 4294901760, %v497_v52 }
  0xe2   : > { %v705_v58 = vand.u32 4294901760, %v704_v53 }
  0xe3   : > { %v545_v56 = vand.u32 4294901760, %v544_v54  ;;  %v520_v57 = vsub.f32 %v497_v52, %v519_v55 }
  0xe4   : > { %644 = vmatmul.f32.vlgmr.msra.gmra.mxu1 %v519_v55  ;;  %v706_v63 = vsub.f32 %v704_v53, %v705_v58 }
  0xe5   : > { %754 = vmatpush.msrb.mxu1 %v677_v49  ;;  %571 = vmatpush.xpose.msra.mxu2 %v544_v54  ;;  %v546_v59 = vsub.f32 %v544_v54, %v545_v56  ;;  %v521_v60 = vand.u32 4294901760, %v520_v57 }
  0xe6   : > { %620 = vmatpush.xpose.msra.mxu0 %v545_v56  ;;  %808 = vrot.lane.b32.xlu1 %v2360_v50, %s2197_s11  ;;  %v707_v1 = vand.u32 4294901760, %v706_v63 }
  0xe7   : > { %v547_v61 = vand.u32 4294901760, %v546_v59  ;;  %v522_v62 = vsub.f32 %v520_v57, %v521_v60 }
  0xe9   : > { %622 = vmatmul.f32.vlgmr.msra.gmra.mxu0 %v519_v55  ;;  %548 = vmatpush.xpose.msrb.mxu3 %v547_v61  ;;  %v523_v0 = vand.u32 4294901760, %v522_v62 }
  0xea   : > { %731 = vmatpush.msrb.mxu0 %v704_v53 }
  0xeb   : > { %524 = vmatmul.f32.vlgmr.msrb.gmra.mxu2 %v523_v0 }
  0xec   : > { %678 = vmatpush.msrb.mxu2 %v677_v49  ;;  %550 = vmatmul.f32.vlgmr.msrb.gmra.mxu3 %v519_v55 }
  0xed   : > { %594 = vmatpush.xpose.msra.mxu3 %v517_v51 }
  0xee   : > { %1123 = vrot.lane.b32.xlu1 %v2360_v50, %s2198_s12 }
  0xf1   : > { %708 = vmatpush.msrb.mxu3 %v707_v1 }
  0xf3   : > { %574 = vmatmul.f32.vlgmr.msra.gmra.mxu2 %v520_v57 }
  0xf4   : > { %780 = vmatpush.msra.mxu2 %v705_v58  ;;  %598 = vmatmul.f32.vlgmr.msra.gmra.mxu3 %v521_v60 }
  0xf5   : > { %802 = vmatpush.msra.mxu3 %v677_v49 }
 0x150   : > { %v811_v2 = vpop.permute.xlu1 %810 }
 0x151   : > { %v814_v3 = vsel %vm495_vm1, %v811_v2, 0  ;;  %v992_v31 = vand.u32 4294901760, %v811_v2 }
 0x152   : > { %v831_v4 = vand.u32 4294901760, %v814_v3 }
 0x153   : > { %v1019_v34 = vsub.f32 %v811_v2, %v992_v31 }
 0x154   : > { %v2369_v5 = vsub.f32 %v814_v3, %v831_v4  ;;  %832 = vmatpush.xpose.msra.mxu0 %v831_v4 }
 0x155   : > { %v1020_v39 = vand.u32 4294901760, %v1019_v34 }
 0x156   : > { %v859_v6 = vand.u32 4294901760, %v2369_v5 }
 0x157   : > { %v1021_v43 = vsub.f32 %v1019_v34, %v1020_v39 }
 0x158   : > { %v860_v7 = vsub.f32 %v2369_v5, %v859_v6  ;;  %v809_v28 = vpop.permute.xlu1 %808 }
 0x159   : > { %v812_v30 = vsel %vm495_vm1, %v809_v28, 0 }
 0x15a   : > { %v861_v8 = vand.u32 4294901760, %v860_v7  ;;  %v833_v32 = vand.u32 4294901760, %v812_v30 }
 0x15c   : > { %862 = vmatpush.xpose.msra.mxu1 %v861_v8  ;;  %v834_v36 = vsub.f32 %v812_v30, %v833_v32 }
 0x15e   : > { %v835_v40 = vand.u32 4294901760, %v834_v36 }
 0x160   : > { %v836_v44 = vsub.f32 %v834_v36, %v835_v40 }
 0x161   : > { %v645_v20 = vpop.f32.mrf.mxu1 }
 0x162   : > { %v837_v51 = vand.u32 4294901760, %v836_v44 }
 0x166   : > { %v623_v18 = vpop.f32.mrf.mxu0 }
 0x16e   : > { %v525_v10 = vpop.f32.mrf.mxu2 }
 0x16f   : > { %v551_v11 = vpop.f32.mrf.mxu3  ;;  %v526_v12 = vadd.f32 %v2375_v9, %v525_v10 }
 0x171   : > { %v552_v13 = vadd.f32 %v551_v11, %v526_v12 }
 0x176   : > { %v575_v14 = vpop.f32.mrf.mxu2 }
 0x177   : > { %v576_v15 = vadd.f32 %v575_v14, %v552_v13  ;;  %v599_v16 = vpop.f32.mrf.mxu3 }
 0x179   : > { %v600_v17 = vadd.f32 %v599_v16, %v576_v15 }
 0x17b   : > { %v624_v19 = vadd.f32 %v623_v18, %v600_v17 }
 0x17d   : > { %v646_v21 = vadd.f32 %v645_v20, %v624_v19 }
 0x17f   : > { %v648_v22 = vsel %vm495_vm1, %v646_v21, -inf }
 0x180   : > { %649 = vmax.xlane.f32.xlu0 %v648_v22 }
 0x1f3   : > { %v650_v23 = vpop.xlane.xlu0 %649 }
 0x1f4   : > { %v651_v24 = vsub.f32 %v646_v21, %v650_v23  ;;  %v1124_v23 = vpop.permute.xlu1 %1123 }
 0x1f6   : > { %v652_v25 = vmul.f32 1.442695, %v651_v24 }
 0x1f8   : > { %1996 = vpow2.f32 %v652_v25  ;;  %v1127_v25 = vsel %vm495_vm1, %v1124_v23, 0 }
 0x1fe   : > { %v1997_v26 = vpop.eup %1996 }
 0x1ff   : > { %v654_v27 = vsel %vm495_vm1, %v1997_v26, 0.0 }
 0x200   : > { %655 = vadd.xlane.f32.xlu0 %v654_v27  ;;  %v1148_v27 = vand.u32 4294901760, %v1127_v25 }
 0x214   : > { %1125 = vrot.lane.b32.xlu0 %v2353_v47, %s2198_s12 }
 0x21c   : > { %1438 = vrot.lane.b32.xlu0 %v2360_v50, %s2199_s23  ;;  %v1022_v50 = vand.u32 4294901760, %v1021_v43 }
 0x273   : > { %v656_v29 = vpop.xlane.xlu0 %655 }
 0x274   : > { %1998 = vrcp.f32 %v656_v29 }
 0x27a   : > { %v1999_v33 = vpop.eup %1998 }
 0x27b   : > { %v658_v35 = vmul.f32 %v1999_v33, %v1997_v26 }
 0x27d   : > { %v660_v37 = vsel %vm495_vm1, %v658_v35, 0 }
 0x27e   : > { %v679_v38 = vand.u32 4294901760, %v660_v37 }
 0x280   : > { %710 = vmatmul.f32.vlgmr.msrb.gmra.mxu3 %v679_v38  ;;  %v680_v41 = vsub.f32 %v660_v37, %v679_v38 }
 0x281   : > { %908 = vmatpush.xpose.msrb.mxu3 %v831_v4 }
 0x282   : > { %734 = vmatmul.f32.vlgmr.msrb.gmra.mxu0 %v680_v41  ;;  %v681_v42 = vand.u32 4294901760, %v680_v41 }
 0x283   : > { %934 = vmatpush.xpose.msrb.mxu0 %v859_v6 }
 0x284   : > { %758 = vmatmul.f32.vlgmr.msrb.gmra.mxu1 %v681_v42  ;;  %v682_v45 = vsub.f32 %v680_v41, %v681_v42 }
 0x285   : > { %956 = vmatpush.xpose.msrb.mxu1 %v831_v4 }
 0x286   : > { %v2386_v46 = vpop.permute.xlu0 %1125  ;;  %v683_v48 = vand.u32 4294901760, %v682_v45 }
 0x287   : > { %v1129_v49 = vsel %vm495_vm1, %v2386_v46, 0  ;;  %v1307_v26 = vand.u32 4294901760, %v2386_v46 }
 0x288   : > { %v2390_v52 = vand.u32 4294901760, %v1129_v49  ;;  %684 = vmatmul.f32.vlgmr.msrb.gmra.mxu2 %v683_v48  ;;  %804 = vmatmul.f32.vlgmr.msra.gmra.mxu3 %v679_v38 }
 0x289   : > { %885 = vmatpush.xpose.msrb.mxu2 %v2369_v5  ;;  %1023 = vmatpush.msra.mxu3 %v1022_v50  ;;  %v1334_v29 = vsub.f32 %v2386_v46, %v1307_v26 }
 0x28a   : > { %v2394_v53 = vsub.f32 %v1129_v49, %v2390_v52  ;;  %838 = vmatmul.f32.vlgmr.msra.gmra.mxu0 %v837_v51 }
 0x28b   : > { %1046 = vmatpush.msra.mxu0 %v1019_v34  ;;  %v1335_v34 = vand.u32 4294901760, %v1334_v29 }
 0x28c   : > { %v1174_v54 = vand.u32 4294901760, %v2394_v53  ;;  %864 = vmatmul.f32.vlgmr.msra.gmra.mxu1 %v833_v32 }
 0x28d   : > { %1069 = vmatpush.msra.mxu1 %v992_v31 }
 0x28e   : > { %v1175_v55 = vsub.f32 %v2394_v53, %v1174_v54 }
 0x290   : > { %782 = vmatmul.f32.vlgmr.msra.gmra.mxu2 %v679_v38  ;;  %912 = vmatmul.f32.vlgmr.msrb.gmra.mxu3 %v835_v40  ;;  %v1176_v56 = vand.u32 4294901760, %v1175_v55  ;;  %v1336_v38 = vsub.f32 %v1334_v29, %v1335_v34 }
 0x291   : > { %993 = vmatpush.msra.mxu2 %v992_v31  ;;  %1117 = vmatpush.msrb.mxu3 %v992_v31  ;;  %v1149_v31 = vsub.f32 %v1127_v25, %v1148_v27 }
 0x292   : > { %936 = vmatmul.f32.vlgmr.msrb.gmra.mxu0 %v833_v32  ;;  %v1337_v42 = vand.u32 4294901760, %v1336_v38 }
 0x293   : > { %1147 = vmatpush.xpose.msrb.mxu0 %v2390_v52  ;;  %v1150_v35 = vand.u32 4294901760, %v1149_v31 }
 0x294   : > { %958 = vmatmul.f32.vlgmr.msrb.gmra.mxu1 %v833_v32 }
 0x295   : > { %1177 = vmatpush.xpose.msrb.mxu1 %v1176_v56 }
 0x298   : > { %888 = vmatmul.f32.vlgmr.msrb.gmra.mxu2 %v834_v36 }
 0x299   : > { %1095 = vmatpush.msrb.mxu2 %v1020_v39  ;;  %v1151_v39 = vsub.f32 %v1149_v31, %v1150_v35 }
 0x29b   : > { %v1152_v43 = vand.u32 4294901760, %v1151_v39 }
 0x2ff   : > { %v735_v57 = vpop.f32.mrf.mxu0 }
 0x301   : > { %v759_v61 = vpop.f32.mrf.mxu1 }
 0x303   : > { %v711_v58 = vpop.f32.mrf.mxu3 }
 0x307   : > { %v839_v0 = vpop.f32.mrf.mxu0 }
 0x308   : > { %v840_v4 = vadd.f32 %v2375_v9, %v839_v0 }
 0x309   : > { %v865_v6 = vpop.f32.mrf.mxu1 }
 0x30a   : > { %v866_v7 = vadd.f32 %v865_v6, %v840_v4 }
 0x30b   : > { %v685_v59 = vpop.f32.mrf.mxu2  ;;  %v805_v1 = vpop.f32.mrf.mxu3 }
 0x30c   : > { %v712_v60 = vadd.f32 %v711_v58, %v685_v59 }
 0x30e   : > { %v736_v62 = vadd.f32 %v735_v57, %v712_v60 }
 0x30f   : > { %v937_v13 = vpop.f32.mrf.mxu0 }
 0x310   : > { %v760_v63 = vadd.f32 %v759_v61, %v736_v62 }
 0x311   : > { %v959_v15 = vpop.f32.mrf.mxu1 }
 0x313   : > { %v783_v2 = vpop.f32.mrf.mxu2  ;;  %v913_v11 = vpop.f32.mrf.mxu3 }
 0x314   : > { %v784_v3 = vadd.f32 %v783_v2, %v760_v63 }
 0x316   : > { %v2402_v5 = vadd.f32 %v805_v1, %v784_v3 }
 0x31b   : > { %v889_v8 = vpop.f32.mrf.mxu2 }
 0x31c   : > { %v890_v10 = vadd.f32 %v889_v8, %v866_v7 }
 0x31e   : > { %v914_v12 = vadd.f32 %v913_v11, %v890_v10 }
 0x320   : > { %v938_v14 = vadd.f32 %v937_v13, %v914_v12 }
 0x322   : > { %v960_v16 = vadd.f32 %v959_v15, %v938_v14 }
 0x324   : > { %v962_v17 = vsel %vm495_vm1, %v960_v16, -inf }
 0x325   : > { %963 = vmax.xlane.f32.xlu2 %v962_v17 }
 0x398   : > { %v964_v18 = vpop.xlane.xlu2 %963 }
 0x399   : > { %v965_v19 = vsub.f32 %v960_v16, %v964_v18 }
 0x39b   : > { %v966_v20 = vmul.f32 1.442695, %v965_v19  ;;  %v1439_v19 = vpop.permute.xlu0 %1438 }
 0x39d   : > { %2000 = vpow2.f32 %v966_v20  ;;  %v1442_v20 = vsel %vm495_vm1, %v1439_v19, 0 }
 0x3a3   : > { %v2001_v21 = vpop.eup %2000 }
 0x3a4   : > { %v968_v22 = vsel %vm495_vm1, %v2001_v21, 0.0 }
 0x3a5   : > { %969 = vadd.xlane.f32.xlu2 %v968_v22  ;;  %v1463_v22 = vand.u32 4294901760, %v1442_v20 }
 0x418   : > { %v970_v24 = vpop.xlane.xlu2 %969 }
 0x419   : > { %2002 = vrcp.f32 %v970_v24 }
 0x41f   : > { %v2003_v28 = vpop.eup %2002 }
 0x420   : > { %v972_v30 = vmul.f32 %v2003_v28, %v2001_v21 }
 0x422   : > { %v975_v32 = vsel %vm495_vm1, %v972_v30, 0 }
 0x423   : > { %v994_v33 = vand.u32 4294901760, %v975_v32 }
 0x425   : > { %1025 = vmatmul.f32.vlgmr.msra.gmra.mxu3 %v994_v33  ;;  %v995_v36 = vsub.f32 %v975_v32, %v994_v33 }
 0x426   : > { %1223 = vmatpush.xpose.msra.mxu3 %v2390_v52 }
 0x427   : > { %1049 = vmatmul.f32.vlgmr.msra.gmra.mxu0 %v995_v36  ;;  %v996_v37 = vand.u32 4294901760, %v995_v36 }
 0x428   : > { %1249 = vmatpush.xpose.msra.mxu0 %v1174_v54 }
 0x429   : > { %1073 = vmatmul.f32.vlgmr.msra.gmra.mxu1 %v996_v37  ;;  %v997_v40 = vsub.f32 %v995_v36, %v996_v37 }
 0x42a   : > { %1271 = vmatpush.xpose.msra.mxu1 %v2390_v52 }
 0x42b   : > { %v998_v41 = vand.u32 4294901760, %v997_v40 }
 0x42d   : > { %999 = vmatmul.f32.vlgmr.msra.gmra.mxu2 %v998_v41  ;;  %1119 = vmatmul.f32.vlgmr.msrb.gmra.mxu3 %v994_v33 }
 0x42e   : > { %1200 = vmatpush.xpose.msra.mxu2 %v2394_v53  ;;  %1338 = vmatpush.msrb.mxu3 %v1337_v42 }
 0x42f   : > { %1153 = vmatmul.f32.vlgmr.msrb.gmra.mxu0 %v1152_v43 }
 0x430   : > { %1361 = vmatpush.msrb.mxu0 %v1334_v29 }
 0x431   : > { %1179 = vmatmul.f32.vlgmr.msrb.gmra.mxu1 %v1148_v27 }
 0x432   : > { %1384 = vmatpush.msrb.mxu1 %v1307_v26 }
 0x435   : > { %1097 = vmatmul.f32.vlgmr.msrb.gmra.mxu2 %v994_v33  ;;  %1227 = vmatmul.f32.vlgmr.msra.gmra.mxu3 %v1150_v35 }
 0x436   : > { %1308 = vmatpush.msrb.mxu2 %v1307_v26  ;;  %1432 = vmatpush.msra.mxu3 %v1307_v26  ;;  %v1464_v26 = vsub.f32 %v1442_v20, %v1463_v22 }
 0x437   : > { %1251 = vmatmul.f32.vlgmr.msra.gmra.mxu0 %v1148_v27 }
 0x438   : > { %v1465_v30 = vand.u32 4294901760, %v1464_v26 }
 0x439   : > { %1273 = vmatmul.f32.vlgmr.msra.gmra.mxu1 %v1148_v27 }
 0x43d   : > { %1203 = vmatmul.f32.vlgmr.msra.gmra.mxu2 %v1149_v31 }
 0x43e   : > { %1410 = vmatpush.msra.mxu2 %v1335_v34  ;;  %v1466_v34 = vsub.f32 %v1464_v26, %v1465_v30 }
 0x440   : > { %v1467_v38 = vand.u32 4294901760, %v1466_v34 }
 0x4a4   : > { %v1050_v44 = vpop.f32.mrf.mxu0 }
 0x4a6   : > { %v1074_v49 = vpop.f32.mrf.mxu1 }
 0x4a8   : > { %v1026_v45 = vpop.f32.mrf.mxu3 }
 0x4ac   : > { %v1154_v52 = vpop.f32.mrf.mxu0 }
 0x4ad   : > { %v1155_v56 = vadd.f32 %v2375_v9, %v1154_v52 }
 0x4ae   : > { %v1180_v58 = vpop.f32.mrf.mxu1 }
 0x4af   : > { %v1181_v59 = vadd.f32 %v1180_v58, %v1155_v56 }
 0x4b0   : > { %v1000_v46 = vpop.f32.mrf.mxu2  ;;  %v1120_v53 = vpop.f32.mrf.mxu3 }
 0x4b1   : > { %v1027_v48 = vadd.f32 %v1026_v45, %v1000_v46 }
 0x4b3   : > { %v1051_v50 = vadd.f32 %v1050_v44, %v1027_v48 }
 0x4b4   : > { %v1252_v0 = vpop.f32.mrf.mxu0 }
 0x4b5   : > { %v1075_v51 = vadd.f32 %v1074_v49, %v1051_v50 }
 0x4b6   : > { %v1274_v2 = vpop.f32.mrf.mxu1 }
 0x4b8   : > { %v1098_v54 = vpop.f32.mrf.mxu2  ;;  %v1228_v62 = vpop.f32.mrf.mxu3 }
 0x4b9   : > { %v1099_v55 = vadd.f32 %v1098_v54, %v1075_v51 }
 0x4bb   : > { %v2416_v57 = vadd.f32 %v1120_v53, %v1099_v55 }
 0x4c0   : > { %v1204_v60 = vpop.f32.mrf.mxu2 }
 0x4c1   : > { %v1205_v61 = vadd.f32 %v1204_v60, %v1181_v59 }
 0x4c3   : > { %v1229_v63 = vadd.f32 %v1228_v62, %v1205_v61 }
 0x4c5   : > { %v1253_v1 = vadd.f32 %v1252_v0, %v1229_v63 }
 0x4c7   : > { %v1275_v3 = vadd.f32 %v1274_v2, %v1253_v1 }
 0x4c9   : > { %v1277_v4 = vsel %vm495_vm1, %v1275_v3, -inf }
 0x4ca   : > { %1278 = vmax.xlane.f32.xlu2 %v1277_v4 }
 0x4e2   : > { %1440 = vrot.lane.b32.xlu2 %v2353_v47, %s2199_s23 }
 0x53d   : > { %v1279_v6 = vpop.xlane.xlu2 %1278 }
 0x53e   : > { %v1280_v7 = vsub.f32 %v1275_v3, %v1279_v6 }
 0x540   : > { %v1281_v8 = vmul.f32 1.442695, %v1280_v7 }
 0x542   : > { %2004 = vpow2.f32 %v1281_v8 }
 0x545   : > { %v1441_v10 = vpop.permute.xlu2 %1440 }
 0x546   : > { %v1444_v11 = vsel %vm495_vm1, %v1441_v10, 0  ;;  %v1622_v21 = vand.u32 4294901760, %v1441_v10 }
 0x547   : > { %v1461_v12 = vand.u32 4294901760, %v1444_v11 }
 0x548   : > { %v2005_v13 = vpop.eup %2004  ;;  %v1649_v24 = vsub.f32 %v1441_v10, %v1622_v21 }
 0x549   : > { %v1488_v14 = vsub.f32 %v1444_v11, %v1461_v12  ;;  %1462 = vmatpush.xpose.msra.mxu0 %v1461_v12  ;;  %v1283_v15 = vsel %vm495_vm1, %v2005_v13, 0.0 }
 0x54a   : > { %1284 = vadd.xlane.f32.xlu1 %v1283_v15  ;;  %v1650_v29 = vand.u32 4294901760, %v1649_v24 }
 0x54b   : > { %v1489_v16 = vand.u32 4294901760, %v1488_v14 }
 0x54c   : > { %v1651_v33 = vsub.f32 %v1649_v24, %v1650_v29 }
 0x54d   : > { %v1490_v17 = vsub.f32 %v1488_v14, %v1489_v16 }
 0x54e   : > { %v1652_v37 = vand.u32 4294901760, %v1651_v33 }
 0x54f   : > { %v1491_v18 = vand.u32 4294901760, %v1490_v17 }
 0x551   : > { %1492 = vmatpush.xpose.msra.mxu1 %v1491_v18 }
 0x5bd   : > { %v1285_v47 = vpop.xlane.xlu1 %1284 }
 0x5be   : > { %2006 = vrcp.f32 %v1285_v47 }
 0x5c4   : > { %v2007_v23 = vpop.eup %2006 }
 0x5c5   : > { %v1287_v25 = vmul.f32 %v2007_v23, %v2005_v13 }
 0x5c7   : > { %v1290_v27 = vsel %vm495_vm1, %v1287_v25, 0 }
 0x5c8   : > { %v1309_v28 = vand.u32 4294901760, %v1290_v27 }
 0x5ca   : > { %1340 = vmatmul.f32.vlgmr.msrb.gmra.mxu3 %v1309_v28  ;;  %v1310_v31 = vsub.f32 %v1290_v27, %v1309_v28 }
 0x5cb   : > { %1538 = vmatpush.xpose.msrb.mxu3 %v1461_v12 }
 0x5cc   : > { %1364 = vmatmul.f32.vlgmr.msrb.gmra.mxu0 %v1310_v31  ;;  %v1311_v32 = vand.u32 4294901760, %v1310_v31 }
 0x5cd   : > { %1564 = vmatpush.xpose.msrb.mxu0 %v1489_v16 }
 0x5ce   : > { %1388 = vmatmul.f32.vlgmr.msrb.gmra.mxu1 %v1311_v32  ;;  %v1312_v35 = vsub.f32 %v1310_v31, %v1311_v32 }
 0x5cf   : > { %1586 = vmatpush.xpose.msrb.mxu1 %v1461_v12 }
 0x5d0   : > { %v1313_v36 = vand.u32 4294901760, %v1312_v35 }
 0x5d2   : > { %1314 = vmatmul.f32.vlgmr.msrb.gmra.mxu2 %v1313_v36  ;;  %1434 = vmatmul.f32.vlgmr.msra.gmra.mxu3 %v1309_v28 }
 0x5d3   : > { %1515 = vmatpush.xpose.msrb.mxu2 %v1488_v14  ;;  %1653 = vmatpush.msra.mxu3 %v1652_v37 }
 0x5d4   : > { %1468 = vmatmul.f32.vlgmr.msra.gmra.mxu0 %v1467_v38 }
 0x5d5   : > { %1676 = vmatpush.msra.mxu0 %v1649_v24 }
 0x5d6   : > { %1494 = vmatmul.f32.vlgmr.msra.gmra.mxu1 %v1463_v22 }
 0x5d7   : > { %1699 = vmatpush.msra.mxu1 %v1622_v21 }
 0x5da   : > { %1412 = vmatmul.f32.vlgmr.msra.gmra.mxu2 %v1309_v28  ;;  %1542 = vmatmul.f32.vlgmr.msrb.gmra.mxu3 %v1465_v30 }
 0x5db   : > { %1623 = vmatpush.msra.mxu2 %v1622_v21  ;;  %1747 = vmatpush.msrb.mxu3 %v1622_v21 }
 0x5dc   : > { %1566 = vmatmul.f32.vlgmr.msrb.gmra.mxu0 %v1463_v22 }
 0x5de   : > { %1588 = vmatmul.f32.vlgmr.msrb.gmra.mxu1 %v1463_v22 }
 0x5e2   : > { %1518 = vmatmul.f32.vlgmr.msrb.gmra.mxu2 %v1464_v26 }
 0x5e3   : > { %1725 = vmatpush.msrb.mxu2 %v1650_v29 }
 0x649   : > { %v1365_v39 = vpop.f32.mrf.mxu0 }
 0x64b   : > { %v1389_v43 = vpop.f32.mrf.mxu1 }
 0x64d   : > { %v1341_v40 = vpop.f32.mrf.mxu3 }
 0x651   : > { %v1469_v46 = vpop.f32.mrf.mxu0 }
 0x652   : > { %v1470_v51 = vadd.f32 %v2375_v9, %v1469_v46 }
 0x653   : > { %v1495_v53 = vpop.f32.mrf.mxu1 }
 0x654   : > { %v1496_v54 = vadd.f32 %v1495_v53, %v1470_v51 }
 0x655   : > { %v1315_v41 = vpop.f32.mrf.mxu2  ;;  %v1435_v48 = vpop.f32.mrf.mxu3 }
 0x656   : > { %v1342_v42 = vadd.f32 %v1341_v40, %v1315_v41 }
 0x658   : > { %v1366_v44 = vadd.f32 %v1365_v39, %v1342_v42 }
 0x659   : > { %v1567_v60 = vpop.f32.mrf.mxu0 }
 0x65a   : > { %v1390_v45 = vadd.f32 %v1389_v43, %v1366_v44 }
 0x65b   : > { %v1589_v62 = vpop.f32.mrf.mxu1 }
 0x65d   : > { %v1413_v49 = vpop.f32.mrf.mxu2  ;;  %v1543_v58 = vpop.f32.mrf.mxu3 }
 0x65e   : > { %v1414_v50 = vadd.f32 %v1413_v49, %v1390_v45 }
 0x660   : > { %v1436_v52 = vadd.f32 %v1435_v48, %v1414_v50 }
 0x665   : > { %v1519_v55 = vpop.f32.mrf.mxu2 }
 0x666   : > { %v1520_v56 = vadd.f32 %v1519_v55, %v1496_v54 }
 0x668   : > { %v1544_v59 = vadd.f32 %v1543_v58, %v1520_v56 }
 0x66a   : > { %v1568_v61 = vadd.f32 %v1567_v60, %v1544_v59 }
 0x66c   : > { %v1590_v63 = vadd.f32 %v1589_v62, %v1568_v61 }
 0x66e   : > { %v1592_v0 = vsel %vm495_vm1, %v1590_v63, -inf }
 0x66f   : > { %1593 = vmax.xlane.f32.xlu0 %v1592_v0 }
 0x683   : > { %1754 = vrot.lane.b32.xlu0 %v2416_v57, %s2200_s24 }
 0x6e2   : > { %v1594_v1 = vpop.xlane.xlu0 %1593 }
 0x6e3   : > { %v1595_v9 = vsub.f32 %v1590_v63, %v1594_v1 }
 0x6e5   : > { %v1596_v2 = vmul.f32 1.442695, %v1595_v9 }
 0x6e7   : > { %2008 = vpow2.f32 %v1596_v2 }
 0x6ed   : > { %v2009_v3 = vpop.eup %2008 }
 0x6ee   : > { %v1598_v4 = vsel %vm495_vm1, %v2009_v3, 0.0 }
 0x6ef   : > { %1599 = vadd.xlane.f32.xlu2 %v1598_v4 }
 0x6f5   : > { %v1755_v27 = vpop.permute.xlu0 %1754 }
 0x6f6   : > { %v1757_v28 = vsel %vm495_vm1, %v2402_v5, %v1755_v27 }
 0x762   : > { %v1600_v6 = vpop.xlane.xlu2 %1599 }
 0x763   : > { %2010 = vrcp.f32 %v1600_v6 }
 0x769   : > { %v2011_v7 = vpop.eup %2010 }
 0x76a   : > { %v1602_v8 = vmul.f32 %v2011_v7, %v2009_v3 }
 0x76c   : > { %v1605_v10 = vsel %vm495_vm1, %v1602_v8, 0 }
 0x76d   : > { %v1624_v11 = vand.u32 4294901760, %v1605_v10 }
 0x76f   : > { %1655 = vmatmul.f32.vlgmr.msra.gmra.mxu3 %v1624_v11  ;;  %v1625_v12 = vsub.f32 %v1605_v10, %v1624_v11 }
 0x771   : > { %1679 = vmatmul.f32.vlgmr.msra.gmra.mxu0 %v1625_v12  ;;  %v1626_v13 = vand.u32 4294901760, %v1625_v12 }
 0x773   : > { %1703 = vmatmul.f32.vlgmr.msra.gmra.mxu1 %v1626_v13  ;;  %v1627_v57 = vsub.f32 %v1625_v12, %v1626_v13 }
 0x775   : > { %v1628_v14 = vand.u32 4294901760, %v1627_v57 }
 0x777   : > { %1629 = vmatmul.f32.vlgmr.msra.gmra.mxu2 %v1628_v14  ;;  %1749 = vmatmul.f32.vlgmr.msrb.gmra.mxu3 %v1624_v11 }
 0x77f   : > { %1727 = vmatmul.f32.vlgmr.msrb.gmra.mxu2 %v1624_v11 }
 0x7ee   : > { %v1680_v18 = vpop.f32.mrf.mxu0 }
 0x7f0   : > { %v1704_v47 = vpop.f32.mrf.mxu1 }
 0x7f2   : > { %v1656_v15 = vpop.f32.mrf.mxu3 }
 0x7fa   : > { %v1630_v16 = vpop.f32.mrf.mxu2  ;;  %v1750_v23 = vpop.f32.mrf.mxu3 }
 0x7fb   : > { %v1657_v17 = vadd.f32 %v1656_v15, %v1630_v16 }
 0x7fd   : > { %v1681_v19 = vadd.f32 %v1680_v18, %v1657_v17 }
 0x7ff   : > { %v1705_v20 = vadd.f32 %v1704_v47, %v1681_v19 }
 0x802   : > { %v1728_v21 = vpop.f32.mrf.mxu2 }
 0x803   : > { %v1729_v22 = vadd.f32 %v1728_v21, %v1705_v20 }
 0x805   : > { %v1751_v24 = vadd.f32 %v1750_v23, %v1729_v22 }
 0x807   : > { %1759 = vrot.lane.b32.xlu1 %v1751_v24, %s2200_s24 }
 0x879   : > { %v1760_v25 = vpop.permute.xlu1 %1759 }
 0x87a   : > { %v1762_v26 = vsel %vm495_vm1, %v1436_v52, %v1760_v25 }
 0x87b   : > { %1764 = vrot.lane.b32.xlu2 %v1762_v26, %s2201_s26 }
 0x8d5   : > { %v1765_v29 = vpop.permute.xlu2 %1764 }
 0x8d6   : > { %v1768_v30 = vsel %vm1767_vm2, %v1757_v28, %v1765_v29 }
 0x8d7   : > { %1769 = vst.msk [vmem:[%s279_s6] sm:$0xff] %vm289_vm0, %v1768_v30 }
 0x8d8   : > { %2129 = shalt.err (!%p2126_p13)
}
 0x8d9   : > { %1917 = dma.vmem_to_hbm [thread:$0]  (%p2298_p4), %s1785_s9, 128, %s1787_s22, %s1771_s18  }
 0x8da PF: > { %s1798_s8 = sand.u32 1, %s2172_s15   ;;  %p1931_p0 = pnand %p1898_p6, %p2306_p7 }
 0x8db   : > { %s1799_s11 = scalar_lea.sflag [#allocation4], %s1798_s8 }
 0x8dc   : > { %p1932_p2 = pneg %p1931_p0 }
 0x8de   : > { %2167 = dma.done.wait (%p1932_p2), %s1799_s11, 128  }
 0x8df   : > { %2169 = vsyncadd (%p1932_p2), %s1799_s11, 4294967168  ;;  %s23_s20 = sadd.s32 1, %s2192_s20   ;;  %s2496_s12 = sld [smem:[#allocation13_spill]] }
 0x8e0   : > { %p20_p5 = scmp.ge.s32.totalorder %s23_s20, 4   ;;  %s2497_s17 = sld [smem:[#allocation15_spill]] }
 0x8e1   : > { %s2498_s10 = sld [smem:[#allocation14_spill]]  ;;  %s2499_s15 = smov %s2176_s16 }
 0x8e2   : > { %s2501_s18 = smov %s2188_s19 }
 0x8e3   :  { %22 = sbr.rel (!%p20_p5) target bundleno = 10 (0xa), region = 98 }
 0x8e5   : > { %s2500_s16 = smov %s2496_s12 }
 0x8e7   : > { %s2502_s19 = smov %s2498_s10 }
 0x8e8   :  { %1805 = vsyncpa [#allocation3], 1 }
 0x8e9   :  { %1807 = vsyncpa [#allocation3 + $0x1], 1 }
 0x8ea   :  { %1808 = vsyncpa [#allocation6], 1 }
 0x8eb   :  { %1810 = vsyncpa [#allocation6 + $0x1], 1 }
 0x8ec   :  { %1811 = vsyncpa [#allocation4], 1 }
 0x8ed   :  { %1813 = vsyncpa [#allocation4 + $0x1], 1 }

</bundles_post_ra>
